<compile_context>
chip_gen: v7x
topology: tpu7x:2x2x1
jax: 0.10.0
libtpu: 0.0.40
codegen_flags: <defaults>
</compile_context>

<pallas_src>
import itertools

import jax
import jax.numpy as jnp
import numpy as np
from jax import lax
from jax.experimental import pallas as pl
from jax.experimental.pallas import tpu as pltpu  # noqa: F401  (TPU backend assumed)


# Contract last dim of both operands: (M, K) x (N, K) -> (M, N)  ==  A @ B^T.
_NT_DIMS = (((1,), (1,)), ((), ()))


def _bcast_index(out_idx, operand_batch_shape):
    """Map a broadcast batch index tuple onto an operand's own batch dims."""
    nb = len(operand_batch_shape)
    if nb == 0:
        return ()
    tail = out_idx[len(out_idx) - nb:]
    return tuple(0 if operand_batch_shape[d] == 1 else tail[d] for d in range(nb))


def _emit_matmul_nt(x_ref, y_ref, o_ref):
    """Emit (statically unrolled) A @ B^T for one problem inside the fused kernel."""
    xb = x_ref.shape[:-2]
    yb = y_ref.shape[:-2]
    ob = o_ref.shape[:-2]
    for idx in itertools.product(*(range(d) for d in ob)):
        xi = _bcast_index(idx, xb)
        yi = _bcast_index(idx, yb)
        x2 = x_ref[xi] if xi else x_ref[...]   # (M, K)
        y2 = y_ref[yi] if yi else y_ref[...]   # (N, K)
        out = lax.dot_general(
            x2, y2, dimension_numbers=_NT_DIMS,
            preferred_element_type=jnp.float32,
        ).astype(o_ref.dtype)
        if idx:
            o_ref[idx] = out
        else:
            o_ref[...] = out


def _make_fused_kernel(n_problems):
    def kernel(*refs):
        in_refs = refs[: 2 * n_problems]
        out_refs = refs[2 * n_problems:]
        for p in range(n_problems):
            _emit_matmul_nt(in_refs[2 * p], in_refs[2 * p + 1], out_refs[p])
    return kernel


def _prepare(x, y):
    """Canonicalize one torch.matmul(x, y.transpose(-2,-1)) problem.

    Returns (x_kernel, y_kernel, out ShapeDtypeStruct, postprocess fn).
    """
    assert y.ndim >= 2, "right operand must have ndim >= 2 (transpose(-2,-1))"
    squeeze_m = (x.ndim == 1)
    if squeeze_m:
        x = x[None, :]                       # (1, K)

    M, K = x.shape[-2:]
    N, K2 = y.shape[-2:]
    assert K == K2, f"contraction mismatch: {K} vs {K2}"

    xb = x.shape[:-2]
    yb = y.shape[:-2]
    out_dtype = jnp.result_type(x.dtype, y.dtype)

    if len(yb) == 0 and len(xb) > 0:
        # Right operand broadcast over the whole batch: fold batch into M so
        # the MXU sees one taller matmul instead of B small ones.
        rows = int(np.prod(xb)) * M
        x = x.reshape((rows, K))
        kernel_out_shape = (rows, N)
        final_shape = tuple(xb) + (M, N)
        post = lambda o, s=final_shape: o.reshape(s)
    else:
        batch = tuple(jnp.broadcast_shapes(xb, yb))
        kernel_out_shape = batch + (M, N)
        if squeeze_m:
            post = lambda o: jnp.squeeze(o, axis=-2)   # drop the prepended M=1
        else:
            post = lambda o: o

    return x, y, jax.ShapeDtypeStruct(kernel_out_shape, out_dtype), post


@jax.jit
def model_forward(*operands):
    """(a0, a1, b0, b1, ..., l0, l1) -> 12 transposed matmul results."""
    assert len(operands) % 2 == 0
    n = len(operands) // 2

    kernel_inputs = []
    out_shapes = []
    posts = []
    for p in range(n):
        x_k, y_k, o_sds, post = _prepare(operands[2 * p], operands[2 * p + 1])
        kernel_inputs += [x_k, y_k]
        out_shapes.append(o_sds)
        posts.append(post)

    # Single launch: every operand / result mapped whole into VMEM (all KB-scale).
    outs = pl.pallas_call(
        _make_fused_kernel(n),
        out_shape=tuple(out_shapes),
    )(*kernel_inputs)

    return tuple(post(o) for post, o in zip(posts, outs))


def _reference(x, y):
    return jnp.matmul(x, jnp.swapaxes(y, -2, -1))


if __name__ == "__main__":
    key = jax.random.PRNGKey(0)

    # Small, diverse shapes covering torch.matmul's broadcasting rules:
    #   2D x 2D, batched 3D/4D, batch broadcasting, 1-D left operand, etc.
    shape_pairs = [
        ((8, 16), (12, 16)),              # a: plain 2D
        ((2, 8, 16), (2, 12, 16)),        # b: batched 3D
        ((2, 3, 8, 16), (2, 3, 12, 16)),  # c: batched 4D
        ((16,), (12, 16)),                # d: 1D left operand
        ((8, 16), (2, 12, 16)),           # e: left broadcast over batch
        ((2, 8, 16), (12, 16)),           # f: right broadcast (batch folded into M)
        ((2, 3, 8, 16), (12, 16)),        # g: right broadcast over 2 batch dims
        ((16,), (2, 12, 16)),             # h: 1D left vs batched right
        ((2, 1, 8, 16), (1, 3, 12, 16)),  # i: mutual batch broadcasting
        ((7, 20), (9, 20)),               # j: non-aligned 2D
        ((3, 5, 24), (3, 6, 24)),         # k: batched, non-aligned
        ((2, 2, 10, 12), (2, 2, 14, 12)), # l: 4D, non-aligned
    ]

    inputs = []
    for s0, s1 in shape_pairs:
        key, k0_, k1_ = jax.random.split(key, 3)
        inputs.append(jax.random.normal(k0_, s0, dtype=jnp.float32))
        inputs.append(jax.random.normal(k1_, s1, dtype=jnp.float32))

    outs = model_forward(*inputs)
    outs = jax.block_until_ready(outs)

    # Verify against plain-JAX reference of torch.matmul(x, y.transpose(-2,-1)).
    for idx, out in enumerate(outs):
        x = inputs[2 * idx]
        y = inputs[2 * idx + 1]
        ref = _reference(x, y)
        np.testing.assert_allclose(
            np.asarray(out), np.asarray(ref), rtol=1e-5, atol=1e-5
        )

    print("KERNEL_OK")
</pallas_src>

<mosaic_0001>
module attributes {stable_mosaic.version = 11 : i64} {
  func.func @kernel(%arg0: memref<8x16xf32, #tpu.memory_space<vmem>>, %arg1: memref<12x16xf32, #tpu.memory_space<vmem>>, %arg2: memref<2x8x16xf32, #tpu.memory_space<vmem>>, %arg3: memref<2x12x16xf32, #tpu.memory_space<vmem>>, %arg4: memref<2x3x8x16xf32, #tpu.memory_space<vmem>>, %arg5: memref<2x3x12x16xf32, #tpu.memory_space<vmem>>, %arg6: memref<1x16xf32, #tpu.memory_space<vmem>>, %arg7: memref<12x16xf32, #tpu.memory_space<vmem>>, %arg8: memref<8x16xf32, #tpu.memory_space<vmem>>, %arg9: memref<2x12x16xf32, #tpu.memory_space<vmem>>, %arg10: memref<16x16xf32, #tpu.memory_space<vmem>>, %arg11: memref<12x16xf32, #tpu.memory_space<vmem>>, %arg12: memref<48x16xf32, #tpu.memory_space<vmem>>, %arg13: memref<12x16xf32, #tpu.memory_space<vmem>>, %arg14: memref<1x16xf32, #tpu.memory_space<vmem>>, %arg15: memref<2x12x16xf32, #tpu.memory_space<vmem>>, %arg16: memref<2x1x8x16xf32, #tpu.memory_space<vmem>>, %arg17: memref<1x3x12x16xf32, #tpu.memory_space<vmem>>, %arg18: memref<7x20xf32, #tpu.memory_space<vmem>>, %arg19: memref<9x20xf32, #tpu.memory_space<vmem>>, %arg20: memref<3x5x24xf32, #tpu.memory_space<vmem>>, %arg21: memref<3x6x24xf32, #tpu.memory_space<vmem>>, %arg22: memref<2x2x10x12xf32, #tpu.memory_space<vmem>>, %arg23: memref<2x2x14x12xf32, #tpu.memory_space<vmem>>, %arg24: memref<8x12xf32, #tpu.memory_space<vmem>>, %arg25: memref<2x8x12xf32, #tpu.memory_space<vmem>>, %arg26: memref<2x3x8x12xf32, #tpu.memory_space<vmem>>, %arg27: memref<1x12xf32, #tpu.memory_space<vmem>>, %arg28: memref<2x8x12xf32, #tpu.memory_space<vmem>>, %arg29: memref<16x12xf32, #tpu.memory_space<vmem>>, %arg30: memref<48x12xf32, #tpu.memory_space<vmem>>, %arg31: memref<2x1x12xf32, #tpu.memory_space<vmem>>, %arg32: memref<2x3x8x12xf32, #tpu.memory_space<vmem>>, %arg33: memref<7x9xf32, #tpu.memory_space<vmem>>, %arg34: memref<3x5x6xf32, #tpu.memory_space<vmem>>, %arg35: memref<2x2x10x14xf32, #tpu.memory_space<vmem>>) attributes {dimension_semantics = [], scalar_prefetch = 0 : i64, scratch_operands = 0 : i64, tpu.core_type = #tpu.core_type<tc>} {
    %c0 = arith.constant 0 : index
    %c0_0 = arith.constant 0 : index
    %0 = vector.load %arg0[%c0, %c0_0] : memref<8x16xf32, #tpu.memory_space<vmem>>, vector<8x16xf32>
    %c0_1 = arith.constant 0 : index
    %c0_2 = arith.constant 0 : index
    %1 = vector.load %arg1[%c0_1, %c0_2] : memref<12x16xf32, #tpu.memory_space<vmem>>, vector<12x16xf32>
    %cst = arith.constant dense<0.000000e+00> : vector<8x12xf32>
    %2 = tpu.matmul %0, %1, %cst {dimension_numbers = #tpu.dot_dimension_numbers<[1], [1], [0], [0], [0, 0, 1, 0], [], []>} : vector<8x16xf32>, vector<12x16xf32>, vector<8x12xf32> -> vector<8x12xf32>
    %c0_3 = arith.constant 0 : index
    %c0_4 = arith.constant 0 : index
    %3 = vector.load %arg24[%c0_3, %c0_4] : memref<8x12xf32, #tpu.memory_space<vmem>>, vector<8x12xf32>
    tpu.vector_store %arg24[%c0_3, %c0_4], %2 {strides = array<i32>} : memref<8x12xf32, #tpu.memory_space<vmem>>, vector<8x12xf32>,
    %c0_5 = arith.constant 0 : index
    %c0_6 = arith.constant 0 : index
    %c0_7 = arith.constant 0 : index
    %4 = vector.load %arg2[%c0_5, %c0_6, %c0_7] : memref<2x8x16xf32, #tpu.memory_space<vmem>>, vector<1x8x16xf32>
    %5 = vector.shape_cast %4 : vector<1x8x16xf32> to vector<8x16xf32>
    %c0_8 = arith.constant 0 : index
    %c0_9 = arith.constant 0 : index
    %c0_10 = arith.constant 0 : index
    %6 = vector.load %arg3[%c0_8, %c0_9, %c0_10] : memref<2x12x16xf32, #tpu.memory_space<vmem>>, vector<1x12x16xf32>
    %7 = vector.shape_cast %6 : vector<1x12x16xf32> to vector<12x16xf32>
    %cst_11 = arith.constant dense<0.000000e+00> : vector<8x12xf32>
    %8 = tpu.matmul %5, %7, %cst_11 {dimension_numbers = #tpu.dot_dimension_numbers<[1], [1], [0], [0], [0, 0, 1, 0], [], []>} : vector<8x16xf32>, vector<12x16xf32>, vector<8x12xf32> -> vector<8x12xf32>
    %c0_12 = arith.constant 0 : index
    %c0_13 = arith.constant 0 : index
    %c0_14 = arith.constant 0 : index
    %9 = vector.load %arg25[%c0_12, %c0_13, %c0_14] : memref<2x8x12xf32, #tpu.memory_space<vmem>>, vector<1x8x12xf32>
    %10 = vector.shape_cast %9 : vector<1x8x12xf32> to vector<8x12xf32>
    %11 = vector.shape_cast %8 : vector<8x12xf32> to vector<1x8x12xf32>
    tpu.vector_store %arg25[%c0_12, %c0_13, %c0_14], %11 {strides = array<i32>} : memref<2x8x12xf32, #tpu.memory_space<vmem>>, vector<1x8x12xf32>,
    %c1 = arith.constant 1 : index
    %c0_15 = arith.constant 0 : index
    %c0_16 = arith.constant 0 : index
    %12 = vector.load %arg2[%c1, %c0_15, %c0_16] : memref<2x8x16xf32, #tpu.memory_space<vmem>>, vector<1x8x16xf32>
    %13 = vector.shape_cast %12 : vector<1x8x16xf32> to vector<8x16xf32>
    %c1_17 = arith.constant 1 : index
    %c0_18 = arith.constant 0 : index
    %c0_19 = arith.constant 0 : index
    %14 = vector.load %arg3[%c1_17, %c0_18, %c0_19] : memref<2x12x16xf32, #tpu.memory_space<vmem>>, vector<1x12x16xf32>
    %15 = vector.shape_cast %14 : vector<1x12x16xf32> to vector<12x16xf32>
    %cst_20 = arith.constant dense<0.000000e+00> : vector<8x12xf32>
    %16 = tpu.matmul %13, %15, %cst_20 {dimension_numbers = #tpu.dot_dimension_numbers<[1], [1], [0], [0], [0, 0, 1, 0], [], []>} : vector<8x16xf32>, vector<12x16xf32>, vector<8x12xf32> -> vector<8x12xf32>
    %c1_21 = arith.constant 1 : index
    %c0_22 = arith.constant 0 : index
    %c0_23 = arith.constant 0 : index
    %17 = vector.load %arg25[%c1_21, %c0_22, %c0_23] : memref<2x8x12xf32, #tpu.memory_space<vmem>>, vector<1x8x12xf32>
    %18 = vector.shape_cast %17 : vector<1x8x12xf32> to vector<8x12xf32>
    %19 = vector.shape_cast %16 : vector<8x12xf32> to vector<1x8x12xf32>
    tpu.vector_store %arg25[%c1_21, %c0_22, %c0_23], %19 {strides = array<i32>} : memref<2x8x12xf32, #tpu.memory_space<vmem>>, vector<1x8x12xf32>,
    %c0_24 = arith.constant 0 : index
    %c0_25 = arith.constant 0 : index
    %c0_26 = arith.constant 0 : index
    %c0_27 = arith.constant 0 : index
    %20 = vector.load %arg4[%c0_24, %c0_25, %c0_26, %c0_27] : memref<2x3x8x16xf32, #tpu.memory_space<vmem>>, vector<1x1x8x16xf32>
    %21 = vector.shape_cast %20 : vector<1x1x8x16xf32> to vector<8x16xf32>
    %c0_28 = arith.constant 0 : index
    %c0_29 = arith.constant 0 : index
    %c0_30 = arith.constant 0 : index
    %c0_31 = arith.constant 0 : index
    %22 = vector.load %arg5[%c0_28, %c0_29, %c0_30, %c0_31] : memref<2x3x12x16xf32, #tpu.memory_space<vmem>>, vector<1x1x12x16xf32>
    %23 = vector.shape_cast %22 : vector<1x1x12x16xf32> to vector<12x16xf32>
    %cst_32 = arith.constant dense<0.000000e+00> : vector<8x12xf32>
    %24 = tpu.matmul %21, %23, %cst_32 {dimension_numbers = #tpu.dot_dimension_numbers<[1], [1], [0], [0], [0, 0, 1, 0], [], []>} : vector<8x16xf32>, vector<12x16xf32>, vector<8x12xf32> -> vector<8x12xf32>
    %c0_33 = arith.constant 0 : index
    %c0_34 = arith.constant 0 : index
    %c0_35 = arith.constant 0 : index
    %c0_36 = arith.constant 0 : index
    %25 = vector.load %arg26[%c0_33, %c0_34, %c0_35, %c0_36] : memref<2x3x8x12xf32, #tpu.memory_space<vmem>>, vector<1x1x8x12xf32>
    %26 = vector.shape_cast %25 : vector<1x1x8x12xf32> to vector<8x12xf32>
    %27 = vector.shape_cast %24 : vector<8x12xf32> to vector<1x1x8x12xf32>
    tpu.vector_store %arg26[%c0_33, %c0_34, %c0_35, %c0_36], %27 {strides = array<i32>} : memref<2x3x8x12xf32, #tpu.memory_space<vmem>>, vector<1x1x8x12xf32>,
    %c0_37 = arith.constant 0 : index
    %c1_38 = arith.constant 1 : index
    %c0_39 = arith.constant 0 : index
    %c0_40 = arith.constant 0 : index
    %28 = vector.load %arg4[%c0_37, %c1_38, %c0_39, %c0_40] : memref<2x3x8x16xf32, #tpu.memory_space<vmem>>, vector<1x1x8x16xf32>
    %29 = vector.shape_cast %28 : vector<1x1x8x16xf32> to vector<8x16xf32>
    %c0_41 = arith.constant 0 : index
    %c1_42 = arith.constant 1 : index
    %c0_43 = arith.constant 0 : index
    %c0_44 = arith.constant 0 : index
    %30 = vector.load %arg5[%c0_41, %c1_42, %c0_43, %c0_44] : memref<2x3x12x16xf32, #tpu.memory_space<vmem>>, vector<1x1x12x16xf32>
    %31 = vector.shape_cast %30 : vector<1x1x12x16xf32> to vector<12x16xf32>
    %cst_45 = arith.constant dense<0.000000e+00> : vector<8x12xf32>
    %32 = tpu.matmul %29, %31, %cst_45 {dimension_numbers = #tpu.dot_dimension_numbers<[1], [1], [0], [0], [0, 0, 1, 0], [], []>} : vector<8x16xf32>, vector<12x16xf32>, vector<8x12xf32> -> vector<8x12xf32>
    %c0_46 = arith.constant 0 : index
    %c1_47 = arith.constant 1 : index
    %c0_48 = arith.constant 0 : index
    %c0_49 = arith.constant 0 : index
    %33 = vector.load %arg26[%c0_46, %c1_47, %c0_48, %c0_49] : memref<2x3x8x12xf32, #tpu.memory_space<vmem>>, vector<1x1x8x12xf32>
    %34 = vector.shape_cast %33 : vector<1x1x8x12xf32> to vector<8x12xf32>
    %35 = vector.shape_cast %32 : vector<8x12xf32> to vector<1x1x8x12xf32>
    tpu.vector_store %arg26[%c0_46, %c1_47, %c0_48, %c0_49], %35 {strides = array<i32>} : memref<2x3x8x12xf32, #tpu.memory_space<vmem>>, vector<1x1x8x12xf32>,
    %c0_50 = arith.constant 0 : index
    %c2 = arith.constant 2 : index
    %c0_51 = arith.constant 0 : index
    %c0_52 = arith.constant 0 : index
    %36 = vector.load %arg4[%c0_50, %c2, %c0_51, %c0_52] : memref<2x3x8x16xf32, #tpu.memory_space<vmem>>, vector<1x1x8x16xf32>
    %37 = vector.shape_cast %36 : vector<1x1x8x16xf32> to vector<8x16xf32>
    %c0_53 = arith.constant 0 : index
    %c2_54 = arith.constant 2 : index
    %c0_55 = arith.constant 0 : index
    %c0_56 = arith.constant 0 : index
    %38 = vector.load %arg5[%c0_53, %c2_54, %c0_55, %c0_56] : memref<2x3x12x16xf32, #tpu.memory_space<vmem>>, vector<1x1x12x16xf32>
    %39 = vector.shape_cast %38 : vector<1x1x12x16xf32> to vector<12x16xf32>
    %cst_57 = arith.constant dense<0.000000e+00> : vector<8x12xf32>
    %40 = tpu.matmul %37, %39, %cst_57 {dimension_numbers = #tpu.dot_dimension_numbers<[1], [1], [0], [0], [0, 0, 1, 0], [], []>} : vector<8x16xf32>, vector<12x16xf32>, vector<8x12xf32> -> vector<8x12xf32>
    %c0_58 = arith.constant 0 : index
    %c2_59 = arith.constant 2 : index
    %c0_60 = arith.constant 0 : index
    %c0_61 = arith.constant 0 : index
    %41 = vector.load %arg26[%c0_58, %c2_59, %c0_60, %c0_61] : memref<2x3x8x12xf32, #tpu.memory_space<vmem>>, vector<1x1x8x12xf32>
    %42 = vector.shape_cast %41 : vector<1x1x8x12xf32> to vector<8x12xf32>
    %43 = vector.shape_cast %40 : vector<8x12xf32> to vector<1x1x8x12xf32>
    tpu.vector_store %arg26[%c0_58, %c2_59, %c0_60, %c0_61], %43 {strides = array<i32>} : memref<2x3x8x12xf32, #tpu.memory_space<vmem>>, vector<1x1x8x12xf32>,
    %c1_62 = arith.constant 1 : index
    %c0_63 = arith.constant 0 : index
    %c0_64 = arith.constant 0 : index
    %c0_65 = arith.constant 0 : index
    %44 = vector.load %arg4[%c1_62, %c0_63, %c0_64, %c0_65] : memref<2x3x8x16xf32, #tpu.memory_space<vmem>>, vector<1x1x8x16xf32>
    %45 = vector.shape_cast %44 : vector<1x1x8x16xf32> to vector<8x16xf32>
    %c1_66 = arith.constant 1 : index
    %c0_67 = arith.constant 0 : index
    %c0_68 = arith.constant 0 : index
    %c0_69 = arith.constant 0 : index
    %46 = vector.load %arg5[%c1_66, %c0_67, %c0_68, %c0_69] : memref<2x3x12x16xf32, #tpu.memory_space<vmem>>, vector<1x1x12x16xf32>
    %47 = vector.shape_cast %46 : vector<1x1x12x16xf32> to vector<12x16xf32>
    %cst_70 = arith.constant dense<0.000000e+00> : vector<8x12xf32>
    %48 = tpu.matmul %45, %47, %cst_70 {dimension_numbers = #tpu.dot_dimension_numbers<[1], [1], [0], [0], [0, 0, 1, 0], [], []>} : vector<8x16xf32>, vector<12x16xf32>, vector<8x12xf32> -> vector<8x12xf32>
    %c1_71 = arith.constant 1 : index
    %c0_72 = arith.constant 0 : index
    %c0_73 = arith.constant 0 : index
    %c0_74 = arith.constant 0 : index
    %49 = vector.load %arg26[%c1_71, %c0_72, %c0_73, %c0_74] : memref<2x3x8x12xf32, #tpu.memory_space<vmem>>, vector<1x1x8x12xf32>
    %50 = vector.shape_cast %49 : vector<1x1x8x12xf32> to vector<8x12xf32>
    %51 = vector.shape_cast %48 : vector<8x12xf32> to vector<1x1x8x12xf32>
    tpu.vector_store %arg26[%c1_71, %c0_72, %c0_73, %c0_74], %51 {strides = array<i32>} : memref<2x3x8x12xf32, #tpu.memory_space<vmem>>, vector<1x1x8x12xf32>,
    %c1_75 = arith.constant 1 : index
    %c1_76 = arith.constant 1 : index
    %c0_77 = arith.constant 0 : index
    %c0_78 = arith.constant 0 : index
    %52 = vector.load %arg4[%c1_75, %c1_76, %c0_77, %c0_78] : memref<2x3x8x16xf32, #tpu.memory_space<vmem>>, vector<1x1x8x16xf32>
    %53 = vector.shape_cast %52 : vector<1x1x8x16xf32> to vector<8x16xf32>
    %c1_79 = arith.constant 1 : index
    %c1_80 = arith.constant 1 : index
    %c0_81 = arith.constant 0 : index
    %c0_82 = arith.constant 0 : index
    %54 = vector.load %arg5[%c1_79, %c1_80, %c0_81, %c0_82] : memref<2x3x12x16xf32, #tpu.memory_space<vmem>>, vector<1x1x12x16xf32>
    %55 = vector.shape_cast %54 : vector<1x1x12x16xf32> to vector<12x16xf32>
    %cst_83 = arith.constant dense<0.000000e+00> : vector<8x12xf32>
    %56 = tpu.matmul %53, %55, %cst_83 {dimension_numbers = #tpu.dot_dimension_numbers<[1], [1], [0], [0], [0, 0, 1, 0], [], []>} : vector<8x16xf32>, vector<12x16xf32>, vector<8x12xf32> -> vector<8x12xf32>
    %c1_84 = arith.constant 1 : index
    %c1_85 = arith.constant 1 : index
    %c0_86 = arith.constant 0 : index
    %c0_87 = arith.constant 0 : index
    %57 = vector.load %arg26[%c1_84, %c1_85, %c0_86, %c0_87] : memref<2x3x8x12xf32, #tpu.memory_space<vmem>>, vector<1x1x8x12xf32>
    %58 = vector.shape_cast %57 : vector<1x1x8x12xf32> to vector<8x12xf32>
    %59 = vector.shape_cast %56 : vector<8x12xf32> to vector<1x1x8x12xf32>
    tpu.vector_store %arg26[%c1_84, %c1_85, %c0_86, %c0_87], %59 {strides = array<i32>} : memref<2x3x8x12xf32, #tpu.memory_space<vmem>>, vector<1x1x8x12xf32>,
    %c1_88 = arith.constant 1 : index
    %c2_89 = arith.constant 2 : index
    %c0_90 = arith.constant 0 : index
    %c0_91 = arith.constant 0 : index
    %60 = vector.load %arg4[%c1_88, %c2_89, %c0_90, %c0_91] : memref<2x3x8x16xf32, #tpu.memory_space<vmem>>, vector<1x1x8x16xf32>
    %61 = vector.shape_cast %60 : vector<1x1x8x16xf32> to vector<8x16xf32>
    %c1_92 = arith.constant 1 : index
    %c2_93 = arith.constant 2 : index
    %c0_94 = arith.constant 0 : index
    %c0_95 = arith.constant 0 : index
    %62 = vector.load %arg5[%c1_92, %c2_93, %c0_94, %c0_95] : memref<2x3x12x16xf32, #tpu.memory_space<vmem>>, vector<1x1x12x16xf32>
    %63 = vector.shape_cast %62 : vector<1x1x12x16xf32> to vector<12x16xf32>
    %cst_96 = arith.constant dense<0.000000e+00> : vector<8x12xf32>
    %64 = tpu.matmul %61, %63, %cst_96 {dimension_numbers = #tpu.dot_dimension_numbers<[1], [1], [0], [0], [0, 0, 1, 0], [], []>} : vector<8x16xf32>, vector<12x16xf32>, vector<8x12xf32> -> vector<8x12xf32>
    %c1_97 = arith.constant 1 : index
    %c2_98 = arith.constant 2 : index
    %c0_99 = arith.constant 0 : index
    %c0_100 = arith.constant 0 : index
    %65 = vector.load %arg26[%c1_97, %c2_98, %c0_99, %c0_100] : memref<2x3x8x12xf32, #tpu.memory_space<vmem>>, vector<1x1x8x12xf32>
    %66 = vector.shape_cast %65 : vector<1x1x8x12xf32> to vector<8x12xf32>
    %67 = vector.shape_cast %64 : vector<8x12xf32> to vector<1x1x8x12xf32>
    tpu.vector_store %arg26[%c1_97, %c2_98, %c0_99, %c0_100], %67 {strides = array<i32>} : memref<2x3x8x12xf32, #tpu.memory_space<vmem>>, vector<1x1x8x12xf32>,
    %c0_101 = arith.constant 0 : index
    %c0_102 = arith.constant 0 : index
    %68 = vector.load %arg6[%c0_101, %c0_102] : memref<1x16xf32, #tpu.memory_space<vmem>>, vector<1x16xf32>
    %c0_103 = arith.constant 0 : index
    %c0_104 = arith.constant 0 : index
    %69 = vector.load %arg7[%c0_103, %c0_104] : memref<12x16xf32, #tpu.memory_space<vmem>>, vector<12x16xf32>
    %cst_105 = arith.constant dense<0.000000e+00> : vector<1x12xf32>
    %70 = tpu.matmul %68, %69, %cst_105 {dimension_numbers = #tpu.dot_dimension_numbers<[1], [1], [0], [0], [0, 0, 1, 0], [], []>} : vector<1x16xf32>, vector<12x16xf32>, vector<1x12xf32> -> vector<1x12xf32>
    %c0_106 = arith.constant 0 : index
    %c0_107 = arith.constant 0 : index
    %71 = vector.load %arg27[%c0_106, %c0_107] : memref<1x12xf32, #tpu.memory_space<vmem>>, vector<1x12xf32>
    tpu.vector_store %arg27[%c0_106, %c0_107], %70 {strides = array<i32>} : memref<1x12xf32, #tpu.memory_space<vmem>>, vector<1x12xf32>,
    %c0_108 = arith.constant 0 : index
    %c0_109 = arith.constant 0 : index
    %72 = vector.load %arg8[%c0_108, %c0_109] : memref<8x16xf32, #tpu.memory_space<vmem>>, vector<8x16xf32>
    %c0_110 = arith.constant 0 : index
    %c0_111 = arith.constant 0 : index
    %c0_112 = arith.constant 0 : index
    %73 = vector.load %arg9[%c0_110, %c0_111, %c0_112] : memref<2x12x16xf32, #tpu.memory_space<vmem>>, vector<1x12x16xf32>
    %74 = vector.shape_cast %73 : vector<1x12x16xf32> to vector<12x16xf32>
    %cst_113 = arith.constant dense<0.000000e+00> : vector<8x12xf32>
    %75 = tpu.matmul %72, %74, %cst_113 {dimension_numbers = #tpu.dot_dimension_numbers<[1], [1], [0], [0], [0, 0, 1, 0], [], []>} : vector<8x16xf32>, vector<12x16xf32>, vector<8x12xf32> -> vector<8x12xf32>
    %c0_114 = arith.constant 0 : index
    %c0_115 = arith.constant 0 : index
    %c0_116 = arith.constant 0 : index
    %76 = vector.load %arg28[%c0_114, %c0_115, %c0_116] : memref<2x8x12xf32, #tpu.memory_space<vmem>>, vector<1x8x12xf32>
    %77 = vector.shape_cast %76 : vector<1x8x12xf32> to vector<8x12xf32>
    %78 = vector.shape_cast %75 : vector<8x12xf32> to vector<1x8x12xf32>
    tpu.vector_store %arg28[%c0_114, %c0_115, %c0_116], %78 {strides = array<i32>} : memref<2x8x12xf32, #tpu.memory_space<vmem>>, vector<1x8x12xf32>,
    %c0_117 = arith.constant 0 : index
    %c0_118 = arith.constant 0 : index
    %79 = vector.load %arg8[%c0_117, %c0_118] : memref<8x16xf32, #tpu.memory_space<vmem>>, vector<8x16xf32>
    %c1_119 = arith.constant 1 : index
    %c0_120 = arith.constant 0 : index
    %c0_121 = arith.constant 0 : index
    %80 = vector.load %arg9[%c1_119, %c0_120, %c0_121] : memref<2x12x16xf32, #tpu.memory_space<vmem>>, vector<1x12x16xf32>
    %81 = vector.shape_cast %80 : vector<1x12x16xf32> to vector<12x16xf32>
    %cst_122 = arith.constant dense<0.000000e+00> : vector<8x12xf32>
    %82 = tpu.matmul %79, %81, %cst_122 {dimension_numbers = #tpu.dot_dimension_numbers<[1], [1], [0], [0], [0, 0, 1, 0], [], []>} : vector<8x16xf32>, vector<12x16xf32>, vector<8x12xf32> -> vector<8x12xf32>
    %c1_123 = arith.constant 1 : index
    %c0_124 = arith.constant 0 : index
    %c0_125 = arith.constant 0 : index
    %83 = vector.load %arg28[%c1_123, %c0_124, %c0_125] : memref<2x8x12xf32, #tpu.memory_space<vmem>>, vector<1x8x12xf32>
    %84 = vector.shape_cast %83 : vector<1x8x12xf32> to vector<8x12xf32>
    %85 = vector.shape_cast %82 : vector<8x12xf32> to vector<1x8x12xf32>
    tpu.vector_store %arg28[%c1_123, %c0_124, %c0_125], %85 {strides = array<i32>} : memref<2x8x12xf32, #tpu.memory_space<vmem>>, vector<1x8x12xf32>,
    %c0_126 = arith.constant 0 : index
    %c0_127 = arith.constant 0 : index
    %86 = vector.load %arg10[%c0_126, %c0_127] : memref<16x16xf32, #tpu.memory_space<vmem>>, vector<16x16xf32>
    %c0_128 = arith.constant 0 : index
    %c0_129 = arith.constant 0 : index
    %87 = vector.load %arg11[%c0_128, %c0_129] : memref<12x16xf32, #tpu.memory_space<vmem>>, vector<12x16xf32>
    %cst_130 = arith.constant dense<0.000000e+00> : vector<16x12xf32>
    %88 = tpu.matmul %86, %87, %cst_130 {dimension_numbers = #tpu.dot_dimension_numbers<[1], [1], [0], [0], [0, 0, 1, 0], [], []>} : vector<16x16xf32>, vector<12x16xf32>, vector<16x12xf32> -> vector<16x12xf32>
    %c0_131 = arith.constant 0 : index
    %c0_132 = arith.constant 0 : index
    %89 = vector.load %arg29[%c0_131, %c0_132] : memref<16x12xf32, #tpu.memory_space<vmem>>, vector<16x12xf32>
    tpu.vector_store %arg29[%c0_131, %c0_132], %88 {strides = array<i32>} : memref<16x12xf32, #tpu.memory_space<vmem>>, vector<16x12xf32>,
    %c0_133 = arith.constant 0 : index
    %c0_134 = arith.constant 0 : index
    %90 = vector.load %arg12[%c0_133, %c0_134] : memref<48x16xf32, #tpu.memory_space<vmem>>, vector<48x16xf32>
    %c0_135 = arith.constant 0 : index
    %c0_136 = arith.constant 0 : index
    %91 = vector.load %arg13[%c0_135, %c0_136] : memref<12x16xf32, #tpu.memory_space<vmem>>, vector<12x16xf32>
    %cst_137 = arith.constant dense<0.000000e+00> : vector<48x12xf32>
    %92 = tpu.matmul %90, %91, %cst_137 {dimension_numbers = #tpu.dot_dimension_numbers<[1], [1], [0], [0], [0, 0, 1, 0], [], []>} : vector<48x16xf32>, vector<12x16xf32>, vector<48x12xf32> -> vector<48x12xf32>
    %c0_138 = arith.constant 0 : index
    %c0_139 = arith.constant 0 : index
    %93 = vector.load %arg30[%c0_138, %c0_139] : memref<48x12xf32, #tpu.memory_space<vmem>>, vector<48x12xf32>
    tpu.vector_store %arg30[%c0_138, %c0_139], %92 {strides = array<i32>} : memref<48x12xf32, #tpu.memory_space<vmem>>, vector<48x12xf32>,
    %c0_140 = arith.constant 0 : index
    %c0_141 = arith.constant 0 : index
    %94 = vector.load %arg14[%c0_140, %c0_141] : memref<1x16xf32, #tpu.memory_space<vmem>>, vector<1x16xf32>
    %c0_142 = arith.constant 0 : index
    %c0_143 = arith.constant 0 : index
    %c0_144 = arith.constant 0 : index
    %95 = vector.load %arg15[%c0_142, %c0_143, %c0_144] : memref<2x12x16xf32, #tpu.memory_space<vmem>>, vector<1x12x16xf32>
    %96 = vector.shape_cast %95 : vector<1x12x16xf32> to vector<12x16xf32>
    %cst_145 = arith.constant dense<0.000000e+00> : vector<1x12xf32>
    %97 = tpu.matmul %94, %96, %cst_145 {dimension_numbers = #tpu.dot_dimension_numbers<[1], [1], [0], [0], [0, 0, 1, 0], [], []>} : vector<1x16xf32>, vector<12x16xf32>, vector<1x12xf32> -> vector<1x12xf32>
    %c0_146 = arith.constant 0 : index
    %c0_147 = arith.constant 0 : index
    %c0_148 = arith.constant 0 : index
    %98 = vector.load %arg31[%c0_146, %c0_147, %c0_148] : memref<2x1x12xf32, #tpu.memory_space<vmem>>, vector<1x1x12xf32>
    %99 = vector.shape_cast %98 : vector<1x1x12xf32> to vector<1x12xf32>
    %100 = vector.shape_cast %97 : vector<1x12xf32> to vector<1x1x12xf32>
    tpu.vector_store %arg31[%c0_146, %c0_147, %c0_148], %100 {strides = array<i32>} : memref<2x1x12xf32, #tpu.memory_space<vmem>>, vector<1x1x12xf32>,
    %c0_149 = arith.constant 0 : index
    %c0_150 = arith.constant 0 : index
    %101 = vector.load %arg14[%c0_149, %c0_150] : memref<1x16xf32, #tpu.memory_space<vmem>>, vector<1x16xf32>
    %c1_151 = arith.constant 1 : index
    %c0_152 = arith.constant 0 : index
    %c0_153 = arith.constant 0 : index
    %102 = vector.load %arg15[%c1_151, %c0_152, %c0_153] : memref<2x12x16xf32, #tpu.memory_space<vmem>>, vector<1x12x16xf32>
    %103 = vector.shape_cast %102 : vector<1x12x16xf32> to vector<12x16xf32>
    %cst_154 = arith.constant dense<0.000000e+00> : vector<1x12xf32>
    %104 = tpu.matmul %101, %103, %cst_154 {dimension_numbers = #tpu.dot_dimension_numbers<[1], [1], [0], [0], [0, 0, 1, 0], [], []>} : vector<1x16xf32>, vector<12x16xf32>, vector<1x12xf32> -> vector<1x12xf32>
    %c1_155 = arith.constant 1 : index
    %c0_156 = arith.constant 0 : index
    %c0_157 = arith.constant 0 : index
    %105 = vector.load %arg31[%c1_155, %c0_156, %c0_157] : memref<2x1x12xf32, #tpu.memory_space<vmem>>, vector<1x1x12xf32>
    %106 = vector.shape_cast %105 : vector<1x1x12xf32> to vector<1x12xf32>
    %107 = vector.shape_cast %104 : vector<1x12xf32> to vector<1x1x12xf32>
    tpu.vector_store %arg31[%c1_155, %c0_156, %c0_157], %107 {strides = array<i32>} : memref<2x1x12xf32, #tpu.memory_space<vmem>>, vector<1x1x12xf32>,
    %c0_158 = arith.constant 0 : index
    %c0_159 = arith.constant 0 : index
    %c0_160 = arith.constant 0 : index
    %c0_161 = arith.constant 0 : index
    %108 = vector.load %arg16[%c0_158, %c0_159, %c0_160, %c0_161] : memref<2x1x8x16xf32, #tpu.memory_space<vmem>>, vector<1x1x8x16xf32>
    %109 = vector.shape_cast %108 : vector<1x1x8x16xf32> to vector<8x16xf32>
    %c0_162 = arith.constant 0 : index
    %c0_163 = arith.constant 0 : index
    %c0_164 = arith.constant 0 : index
    %c0_165 = arith.constant 0 : index
    %110 = vector.load %arg17[%c0_162, %c0_163, %c0_164, %c0_165] : memref<1x3x12x16xf32, #tpu.memory_space<vmem>>, vector<1x1x12x16xf32>
    %111 = vector.shape_cast %110 : vector<1x1x12x16xf32> to vector<12x16xf32>
    %cst_166 = arith.constant dense<0.000000e+00> : vector<8x12xf32>
    %112 = tpu.matmul %109, %111, %cst_166 {dimension_numbers = #tpu.dot_dimension_numbers<[1], [1], [0], [0], [0, 0, 1, 0], [], []>} : vector<8x16xf32>, vector<12x16xf32>, vector<8x12xf32> -> vector<8x12xf32>
    %c0_167 = arith.constant 0 : index
    %c0_168 = arith.constant 0 : index
    %c0_169 = arith.constant 0 : index
    %c0_170 = arith.constant 0 : index
    %113 = vector.load %arg32[%c0_167, %c0_168, %c0_169, %c0_170] : memref<2x3x8x12xf32, #tpu.memory_space<vmem>>, vector<1x1x8x12xf32>
    %114 = vector.shape_cast %113 : vector<1x1x8x12xf32> to vector<8x12xf32>
    %115 = vector.shape_cast %112 : vector<8x12xf32> to vector<1x1x8x12xf32>
    tpu.vector_store %arg32[%c0_167, %c0_168, %c0_169, %c0_170], %115 {strides = array<i32>} : memref<2x3x8x12xf32, #tpu.memory_space<vmem>>, vector<1x1x8x12xf32>,
    %c0_171 = arith.constant 0 : index
    %c0_172 = arith.constant 0 : index
    %c0_173 = arith.constant 0 : index
    %c0_174 = arith.constant 0 : index
    %116 = vector.load %arg16[%c0_171, %c0_172, %c0_173, %c0_174] : memref<2x1x8x16xf32, #tpu.memory_space<vmem>>, vector<1x1x8x16xf32>
    %117 = vector.shape_cast %116 : vector<1x1x8x16xf32> to vector<8x16xf32>
    %c0_175 = arith.constant 0 : index
    %c1_176 = arith.constant 1 : index
    %c0_177 = arith.constant 0 : index
    %c0_178 = arith.constant 0 : index
    %118 = vector.load %arg17[%c0_175, %c1_176, %c0_177, %c0_178] : memref<1x3x12x16xf32, #tpu.memory_space<vmem>>, vector<1x1x12x16xf32>
    %119 = vector.shape_cast %118 : vector<1x1x12x16xf32> to vector<12x16xf32>
    %cst_179 = arith.constant dense<0.000000e+00> : vector<8x12xf32>
    %120 = tpu.matmul %117, %119, %cst_179 {dimension_numbers = #tpu.dot_dimension_numbers<[1], [1], [0], [0], [0, 0, 1, 0], [], []>} : vector<8x16xf32>, vector<12x16xf32>, vector<8x12xf32> -> vector<8x12xf32>
    %c0_180 = arith.constant 0 : index
    %c1_181 = arith.constant 1 : index
    %c0_182 = arith.constant 0 : index
    %c0_183 = arith.constant 0 : index
    %121 = vector.load %arg32[%c0_180, %c1_181, %c0_182, %c0_183] : memref<2x3x8x12xf32, #tpu.memory_space<vmem>>, vector<1x1x8x12xf32>
    %122 = vector.shape_cast %121 : vector<1x1x8x12xf32> to vector<8x12xf32>
    %123 = vector.shape_cast %120 : vector<8x12xf32> to vector<1x1x8x12xf32>
    tpu.vector_store %arg32[%c0_180, %c1_181, %c0_182, %c0_183], %123 {strides = array<i32>} : memref<2x3x8x12xf32, #tpu.memory_space<vmem>>, vector<1x1x8x12xf32>,
    %c0_184 = arith.constant 0 : index
    %c0_185 = arith.constant 0 : index
    %c0_186 = arith.constant 0 : index
    %c0_187 = arith.constant 0 : index
    %124 = vector.load %arg16[%c0_184, %c0_185, %c0_186, %c0_187] : memref<2x1x8x16xf32, #tpu.memory_space<vmem>>, vector<1x1x8x16xf32>
    %125 = vector.shape_cast %124 : vector<1x1x8x16xf32> to vector<8x16xf32>
    %c0_188 = arith.constant 0 : index
    %c2_189 = arith.constant 2 : index
    %c0_190 = arith.constant 0 : index
    %c0_191 = arith.constant 0 : index
    %126 = vector.load %arg17[%c0_188, %c2_189, %c0_190, %c0_191] : memref<1x3x12x16xf32, #tpu.memory_space<vmem>>, vector<1x1x12x16xf32>
    %127 = vector.shape_cast %126 : vector<1x1x12x16xf32> to vector<12x16xf32>
    %cst_192 = arith.constant dense<0.000000e+00> : vector<8x12xf32>
    %128 = tpu.matmul %125, %127, %cst_192 {dimension_numbers = #tpu.dot_dimension_numbers<[1], [1], [0], [0], [0, 0, 1, 0], [], []>} : vector<8x16xf32>, vector<12x16xf32>, vector<8x12xf32> -> vector<8x12xf32>
    %c0_193 = arith.constant 0 : index
    %c2_194 = arith.constant 2 : index
    %c0_195 = arith.constant 0 : index
    %c0_196 = arith.constant 0 : index
    %129 = vector.load %arg32[%c0_193, %c2_194, %c0_195, %c0_196] : memref<2x3x8x12xf32, #tpu.memory_space<vmem>>, vector<1x1x8x12xf32>
    %130 = vector.shape_cast %129 : vector<1x1x8x12xf32> to vector<8x12xf32>
    %131 = vector.shape_cast %128 : vector<8x12xf32> to vector<1x1x8x12xf32>
    tpu.vector_store %arg32[%c0_193, %c2_194, %c0_195, %c0_196], %131 {strides = array<i32>} : memref<2x3x8x12xf32, #tpu.memory_space<vmem>>, vector<1x1x8x12xf32>,
    %c1_197 = arith.constant 1 : index
    %c0_198 = arith.constant 0 : index
    %c0_199 = arith.constant 0 : index
    %c0_200 = arith.constant 0 : index
    %132 = vector.load %arg16[%c1_197, %c0_198, %c0_199, %c0_200] : memref<2x1x8x16xf32, #tpu.memory_space<vmem>>, vector<1x1x8x16xf32>
    %133 = vector.shape_cast %132 : vector<1x1x8x16xf32> to vector<8x16xf32>
    %c0_201 = arith.constant 0 : index
    %c0_202 = arith.constant 0 : index
    %c0_203 = arith.constant 0 : index
    %c0_204 = arith.constant 0 : index
    %134 = vector.load %arg17[%c0_201, %c0_202, %c0_203, %c0_204] : memref<1x3x12x16xf32, #tpu.memory_space<vmem>>, vector<1x1x12x16xf32>
    %135 = vector.shape_cast %134 : vector<1x1x12x16xf32> to vector<12x16xf32>
    %cst_205 = arith.constant dense<0.000000e+00> : vector<8x12xf32>
    %136 = tpu.matmul %133, %135, %cst_205 {dimension_numbers = #tpu.dot_dimension_numbers<[1], [1], [0], [0], [0, 0, 1, 0], [], []>} : vector<8x16xf32>, vector<12x16xf32>, vector<8x12xf32> -> vector<8x12xf32>
    %c1_206 = arith.constant 1 : index
    %c0_207 = arith.constant 0 : index
    %c0_208 = arith.constant 0 : index
    %c0_209 = arith.constant 0 : index
    %137 = vector.load %arg32[%c1_206, %c0_207, %c0_208, %c0_209] : memref<2x3x8x12xf32, #tpu.memory_space<vmem>>, vector<1x1x8x12xf32>
    %138 = vector.shape_cast %137 : vector<1x1x8x12xf32> to vector<8x12xf32>
    %139 = vector.shape_cast %136 : vector<8x12xf32> to vector<1x1x8x12xf32>
    tpu.vector_store %arg32[%c1_206, %c0_207, %c0_208, %c0_209], %139 {strides = array<i32>} : memref<2x3x8x12xf32, #tpu.memory_space<vmem>>, vector<1x1x8x12xf32>,
    %c1_210 = arith.constant 1 : index
    %c0_211 = arith.constant 0 : index
    %c0_212 = arith.constant 0 : index
    %c0_213 = arith.constant 0 : index
    %140 = vector.load %arg16[%c1_210, %c0_211, %c0_212, %c0_213] : memref<2x1x8x16xf32, #tpu.memory_space<vmem>>, vector<1x1x8x16xf32>
    %141 = vector.shape_cast %140 : vector<1x1x8x16xf32> to vector<8x16xf32>
    %c0_214 = arith.constant 0 : index
    %c1_215 = arith.constant 1 : index
    %c0_216 = arith.constant 0 : index
    %c0_217 = arith.constant 0 : index
    %142 = vector.load %arg17[%c0_214, %c1_215, %c0_216, %c0_217] : memref<1x3x12x16xf32, #tpu.memory_space<vmem>>, vector<1x1x12x16xf32>
    %143 = vector.shape_cast %142 : vector<1x1x12x16xf32> to vector<12x16xf32>
    %cst_218 = arith.constant dense<0.000000e+00> : vector<8x12xf32>
    %144 = tpu.matmul %141, %143, %cst_218 {dimension_numbers = #tpu.dot_dimension_numbers<[1], [1], [0], [0], [0, 0, 1, 0], [], []>} : vector<8x16xf32>, vector<12x16xf32>, vector<8x12xf32> -> vector<8x12xf32>
    %c1_219 = arith.constant 1 : index
    %c1_220 = arith.constant 1 : index
    %c0_221 = arith.constant 0 : index
    %c0_222 = arith.constant 0 : index
    %145 = vector.load %arg32[%c1_219, %c1_220, %c0_221, %c0_222] : memref<2x3x8x12xf32, #tpu.memory_space<vmem>>, vector<1x1x8x12xf32>
    %146 = vector.shape_cast %145 : vector<1x1x8x12xf32> to vector<8x12xf32>
    %147 = vector.shape_cast %144 : vector<8x12xf32> to vector<1x1x8x12xf32>
    tpu.vector_store %arg32[%c1_219, %c1_220, %c0_221, %c0_222], %147 {strides = array<i32>} : memref<2x3x8x12xf32, #tpu.memory_space<vmem>>, vector<1x1x8x12xf32>,
    %c1_223 = arith.constant 1 : index
    %c0_224 = arith.constant 0 : index
    %c0_225 = arith.constant 0 : index
    %c0_226 = arith.constant 0 : index
    %148 = vector.load %arg16[%c1_223, %c0_224, %c0_225, %c0_226] : memref<2x1x8x16xf32, #tpu.memory_space<vmem>>, vector<1x1x8x16xf32>
    %149 = vector.shape_cast %148 : vector<1x1x8x16xf32> to vector<8x16xf32>
    %c0_227 = arith.constant 0 : index
    %c2_228 = arith.constant 2 : index
    %c0_229 = arith.constant 0 : index
    %c0_230 = arith.constant 0 : index
    %150 = vector.load %arg17[%c0_227, %c2_228, %c0_229, %c0_230] : memref<1x3x12x16xf32, #tpu.memory_space<vmem>>, vector<1x1x12x16xf32>
    %151 = vector.shape_cast %150 : vector<1x1x12x16xf32> to vector<12x16xf32>
    %cst_231 = arith.constant dense<0.000000e+00> : vector<8x12xf32>
    %152 = tpu.matmul %149, %151, %cst_231 {dimension_numbers = #tpu.dot_dimension_numbers<[1], [1], [0], [0], [0, 0, 1, 0], [], []>} : vector<8x16xf32>, vector<12x16xf32>, vector<8x12xf32> -> vector<8x12xf32>
    %c1_232 = arith.constant 1 : index
    %c2_233 = arith.constant 2 : index
    %c0_234 = arith.constant 0 : index
    %c0_235 = arith.constant 0 : index
    %153 = vector.load %arg32[%c1_232, %c2_233, %c0_234, %c0_235] : memref<2x3x8x12xf32, #tpu.memory_space<vmem>>, vector<1x1x8x12xf32>
    %154 = vector.shape_cast %153 : vector<1x1x8x12xf32> to vector<8x12xf32>
    %155 = vector.shape_cast %152 : vector<8x12xf32> to vector<1x1x8x12xf32>
    tpu.vector_store %arg32[%c1_232, %c2_233, %c0_234, %c0_235], %155 {strides = array<i32>} : memref<2x3x8x12xf32, #tpu.memory_space<vmem>>, vector<1x1x8x12xf32>,
    %c0_236 = arith.constant 0 : index
    %c0_237 = arith.constant 0 : index
    %156 = vector.load %arg18[%c0_236, %c0_237] : memref<7x20xf32, #tpu.memory_space<vmem>>, vector<7x20xf32>
    %c0_238 = arith.constant 0 : index
    %c0_239 = arith.constant 0 : index
    %157 = vector.load %arg19[%c0_238, %c0_239] : memref<9x20xf32, #tpu.memory_space<vmem>>, vector<9x20xf32>
    %cst_240 = arith.constant dense<0.000000e+00> : vector<7x9xf32>
    %158 = tpu.matmul %156, %157, %cst_240 {dimension_numbers = #tpu.dot_dimension_numbers<[1], [1], [0], [0], [0, 0, 1, 0], [], []>} : vector<7x20xf32>, vector<9x20xf32>, vector<7x9xf32> -> vector<7x9xf32>
    %c0_241 = arith.constant 0 : index
    %c0_242 = arith.constant 0 : index
    %159 = vector.load %arg33[%c0_241, %c0_242] : memref<7x9xf32, #tpu.memory_space<vmem>>, vector<7x9xf32>
    tpu.vector_store %arg33[%c0_241, %c0_242], %158 {strides = array<i32>} : memref<7x9xf32, #tpu.memory_space<vmem>>, vector<7x9xf32>,
    %c0_243 = arith.constant 0 : index
    %c0_244 = arith.constant 0 : index
    %c0_245 = arith.constant 0 : index
    %160 = vector.load %arg20[%c0_243, %c0_244, %c0_245] : memref<3x5x24xf32, #tpu.memory_space<vmem>>, vector<1x5x24xf32>
    %161 = vector.shape_cast %160 : vector<1x5x24xf32> to vector<5x24xf32>
    %c0_246 = arith.constant 0 : index
    %c0_247 = arith.constant 0 : index
    %c0_248 = arith.constant 0 : index
    %162 = vector.load %arg21[%c0_246, %c0_247, %c0_248] : memref<3x6x24xf32, #tpu.memory_space<vmem>>, vector<1x6x24xf32>
    %163 = vector.shape_cast %162 : vector<1x6x24xf32> to vector<6x24xf32>
    %cst_249 = arith.constant dense<0.000000e+00> : vector<5x6xf32>
    %164 = tpu.matmul %161, %163, %cst_249 {dimension_numbers = #tpu.dot_dimension_numbers<[1], [1], [0], [0], [0, 0, 1, 0], [], []>} : vector<5x24xf32>, vector<6x24xf32>, vector<5x6xf32> -> vector<5x6xf32>
    %c0_250 = arith.constant 0 : index
    %c0_251 = arith.constant 0 : index
    %c0_252 = arith.constant 0 : index
    %165 = vector.load %arg34[%c0_250, %c0_251, %c0_252] : memref<3x5x6xf32, #tpu.memory_space<vmem>>, vector<1x5x6xf32>
    %166 = vector.shape_cast %165 : vector<1x5x6xf32> to vector<5x6xf32>
    %167 = vector.shape_cast %164 : vector<5x6xf32> to vector<1x5x6xf32>
    tpu.vector_store %arg34[%c0_250, %c0_251, %c0_252], %167 {strides = array<i32>} : memref<3x5x6xf32, #tpu.memory_space<vmem>>, vector<1x5x6xf32>,
    %c1_253 = arith.constant 1 : index
    %c0_254 = arith.constant 0 : index
    %c0_255 = arith.constant 0 : index
    %168 = vector.load %arg20[%c1_253, %c0_254, %c0_255] : memref<3x5x24xf32, #tpu.memory_space<vmem>>, vector<1x5x24xf32>
    %169 = vector.shape_cast %168 : vector<1x5x24xf32> to vector<5x24xf32>
    %c1_256 = arith.constant 1 : index
    %c0_257 = arith.constant 0 : index
    %c0_258 = arith.constant 0 : index
    %170 = vector.load %arg21[%c1_256, %c0_257, %c0_258] : memref<3x6x24xf32, #tpu.memory_space<vmem>>, vector<1x6x24xf32>
    %171 = vector.shape_cast %170 : vector<1x6x24xf32> to vector<6x24xf32>
    %cst_259 = arith.constant dense<0.000000e+00> : vector<5x6xf32>
    %172 = tpu.matmul %169, %171, %cst_259 {dimension_numbers = #tpu.dot_dimension_numbers<[1], [1], [0], [0], [0, 0, 1, 0], [], []>} : vector<5x24xf32>, vector<6x24xf32>, vector<5x6xf32> -> vector<5x6xf32>
    %c1_260 = arith.constant 1 : index
    %c0_261 = arith.constant 0 : index
    %c0_262 = arith.constant 0 : index
    %173 = vector.load %arg34[%c1_260, %c0_261, %c0_262] : memref<3x5x6xf32, #tpu.memory_space<vmem>>, vector<1x5x6xf32>
    %174 = vector.shape_cast %173 : vector<1x5x6xf32> to vector<5x6xf32>
    %175 = vector.shape_cast %172 : vector<5x6xf32> to vector<1x5x6xf32>
    tpu.vector_store %arg34[%c1_260, %c0_261, %c0_262], %175 {strides = array<i32>} : memref<3x5x6xf32, #tpu.memory_space<vmem>>, vector<1x5x6xf32>,
    %c2_263 = arith.constant 2 : index
    %c0_264 = arith.constant 0 : index
    %c0_265 = arith.constant 0 : index
    %176 = vector.load %arg20[%c2_263, %c0_264, %c0_265] : memref<3x5x24xf32, #tpu.memory_space<vmem>>, vector<1x5x24xf32>
    %177 = vector.shape_cast %176 : vector<1x5x24xf32> to vector<5x24xf32>
    %c2_266 = arith.constant 2 : index
    %c0_267 = arith.constant 0 : index
    %c0_268 = arith.constant 0 : index
    %178 = vector.load %arg21[%c2_266, %c0_267, %c0_268] : memref<3x6x24xf32, #tpu.memory_space<vmem>>, vector<1x6x24xf32>
    %179 = vector.shape_cast %178 : vector<1x6x24xf32> to vector<6x24xf32>
    %cst_269 = arith.constant dense<0.000000e+00> : vector<5x6xf32>
    %180 = tpu.matmul %177, %179, %cst_269 {dimension_numbers = #tpu.dot_dimension_numbers<[1], [1], [0], [0], [0, 0, 1, 0], [], []>} : vector<5x24xf32>, vector<6x24xf32>, vector<5x6xf32> -> vector<5x6xf32>
    %c2_270 = arith.constant 2 : index
    %c0_271 = arith.constant 0 : index
    %c0_272 = arith.constant 0 : index
    %181 = vector.load %arg34[%c2_270, %c0_271, %c0_272] : memref<3x5x6xf32, #tpu.memory_space<vmem>>, vector<1x5x6xf32>
    %182 = vector.shape_cast %181 : vector<1x5x6xf32> to vector<5x6xf32>
    %183 = vector.shape_cast %180 : vector<5x6xf32> to vector<1x5x6xf32>
    tpu.vector_store %arg34[%c2_270, %c0_271, %c0_272], %183 {strides = array<i32>} : memref<3x5x6xf32, #tpu.memory_space<vmem>>, vector<1x5x6xf32>,
    %c0_273 = arith.constant 0 : index
    %c0_274 = arith.constant 0 : index
    %c0_275 = arith.constant 0 : index
    %c0_276 = arith.constant 0 : index
    %184 = vector.load %arg22[%c0_273, %c0_274, %c0_275, %c0_276] : memref<2x2x10x12xf32, #tpu.memory_space<vmem>>, vector<1x1x10x12xf32>
    %185 = vector.shape_cast %184 : vector<1x1x10x12xf32> to vector<10x12xf32>
    %c0_277 = arith.constant 0 : index
    %c0_278 = arith.constant 0 : index
    %c0_279 = arith.constant 0 : index
    %c0_280 = arith.constant 0 : index
    %186 = vector.load %arg23[%c0_277, %c0_278, %c0_279, %c0_280] : memref<2x2x14x12xf32, #tpu.memory_space<vmem>>, vector<1x1x14x12xf32>
    %187 = vector.shape_cast %186 : vector<1x1x14x12xf32> to vector<14x12xf32>
    %cst_281 = arith.constant dense<0.000000e+00> : vector<10x14xf32>
    %188 = tpu.matmul %185, %187, %cst_281 {dimension_numbers = #tpu.dot_dimension_numbers<[1], [1], [0], [0], [0, 0, 1, 0], [], []>} : vector<10x12xf32>, vector<14x12xf32>, vector<10x14xf32> -> vector<10x14xf32>
    %c0_282 = arith.constant 0 : index
    %c0_283 = arith.constant 0 : index
    %c0_284 = arith.constant 0 : index
    %c0_285 = arith.constant 0 : index
    %189 = vector.load %arg35[%c0_282, %c0_283, %c0_284, %c0_285] : memref<2x2x10x14xf32, #tpu.memory_space<vmem>>, vector<1x1x10x14xf32>
    %190 = vector.shape_cast %189 : vector<1x1x10x14xf32> to vector<10x14xf32>
    %191 = vector.shape_cast %188 : vector<10x14xf32> to vector<1x1x10x14xf32>
    tpu.vector_store %arg35[%c0_282, %c0_283, %c0_284, %c0_285], %191 {strides = array<i32>} : memref<2x2x10x14xf32, #tpu.memory_space<vmem>>, vector<1x1x10x14xf32>,
    %c0_286 = arith.constant 0 : index
    %c1_287 = arith.constant 1 : index
    %c0_288 = arith.constant 0 : index
    %c0_289 = arith.constant 0 : index
    %192 = vector.load %arg22[%c0_286, %c1_287, %c0_288, %c0_289] : memref<2x2x10x12xf32, #tpu.memory_space<vmem>>, vector<1x1x10x12xf32>
    %193 = vector.shape_cast %192 : vector<1x1x10x12xf32> to vector<10x12xf32>
    %c0_290 = arith.constant 0 : index
    %c1_291 = arith.constant 1 : index
    %c0_292 = arith.constant 0 : index
    %c0_293 = arith.constant 0 : index
    %194 = vector.load %arg23[%c0_290, %c1_291, %c0_292, %c0_293] : memref<2x2x14x12xf32, #tpu.memory_space<vmem>>, vector<1x1x14x12xf32>
    %195 = vector.shape_cast %194 : vector<1x1x14x12xf32> to vector<14x12xf32>
    %cst_294 = arith.constant dense<0.000000e+00> : vector<10x14xf32>
    %196 = tpu.matmul %193, %195, %cst_294 {dimension_numbers = #tpu.dot_dimension_numbers<[1], [1], [0], [0], [0, 0, 1, 0], [], []>} : vector<10x12xf32>, vector<14x12xf32>, vector<10x14xf32> -> vector<10x14xf32>
    %c0_295 = arith.constant 0 : index
    %c1_296 = arith.constant 1 : index
    %c0_297 = arith.constant 0 : index
    %c0_298 = arith.constant 0 : index
    %197 = vector.load %arg35[%c0_295, %c1_296, %c0_297, %c0_298] : memref<2x2x10x14xf32, #tpu.memory_space<vmem>>, vector<1x1x10x14xf32>
    %198 = vector.shape_cast %197 : vector<1x1x10x14xf32> to vector<10x14xf32>
    %199 = vector.shape_cast %196 : vector<10x14xf32> to vector<1x1x10x14xf32>
    tpu.vector_store %arg35[%c0_295, %c1_296, %c0_297, %c0_298], %199 {strides = array<i32>} : memref<2x2x10x14xf32, #tpu.memory_space<vmem>>, vector<1x1x10x14xf32>,
    %c1_299 = arith.constant 1 : index
    %c0_300 = arith.constant 0 : index
    %c0_301 = arith.constant 0 : index
    %c0_302 = arith.constant 0 : index
    %200 = vector.load %arg22[%c1_299, %c0_300, %c0_301, %c0_302] : memref<2x2x10x12xf32, #tpu.memory_space<vmem>>, vector<1x1x10x12xf32>
    %201 = vector.shape_cast %200 : vector<1x1x10x12xf32> to vector<10x12xf32>
    %c1_303 = arith.constant 1 : index
    %c0_304 = arith.constant 0 : index
    %c0_305 = arith.constant 0 : index
    %c0_306 = arith.constant 0 : index
    %202 = vector.load %arg23[%c1_303, %c0_304, %c0_305, %c0_306] : memref<2x2x14x12xf32, #tpu.memory_space<vmem>>, vector<1x1x14x12xf32>
    %203 = vector.shape_cast %202 : vector<1x1x14x12xf32> to vector<14x12xf32>
    %cst_307 = arith.constant dense<0.000000e+00> : vector<10x14xf32>
    %204 = tpu.matmul %201, %203, %cst_307 {dimension_numbers = #tpu.dot_dimension_numbers<[1], [1], [0], [0], [0, 0, 1, 0], [], []>} : vector<10x12xf32>, vector<14x12xf32>, vector<10x14xf32> -> vector<10x14xf32>
    %c1_308 = arith.constant 1 : index
    %c0_309 = arith.constant 0 : index
    %c0_310 = arith.constant 0 : index
    %c0_311 = arith.constant 0 : index
    %205 = vector.load %arg35[%c1_308, %c0_309, %c0_310, %c0_311] : memref<2x2x10x14xf32, #tpu.memory_space<vmem>>, vector<1x1x10x14xf32>
    %206 = vector.shape_cast %205 : vector<1x1x10x14xf32> to vector<10x14xf32>
    %207 = vector.shape_cast %204 : vector<10x14xf32> to vector<1x1x10x14xf32>
    tpu.vector_store %arg35[%c1_308, %c0_309, %c0_310, %c0_311], %207 {strides = array<i32>} : memref<2x2x10x14xf32, #tpu.memory_space<vmem>>, vector<1x1x10x14xf32>,
    %c1_312 = arith.constant 1 : index
    %c1_313 = arith.constant 1 : index
    %c0_314 = arith.constant 0 : index
    %c0_315 = arith.constant 0 : index
    %208 = vector.load %arg22[%c1_312, %c1_313, %c0_314, %c0_315] : memref<2x2x10x12xf32, #tpu.memory_space<vmem>>, vector<1x1x10x12xf32>
    %209 = vector.shape_cast %208 : vector<1x1x10x12xf32> to vector<10x12xf32>
    %c1_316 = arith.constant 1 : index
    %c1_317 = arith.constant 1 : index
    %c0_318 = arith.constant 0 : index
    %c0_319 = arith.constant 0 : index
    %210 = vector.load %arg23[%c1_316, %c1_317, %c0_318, %c0_319] : memref<2x2x14x12xf32, #tpu.memory_space<vmem>>, vector<1x1x14x12xf32>
    %211 = vector.shape_cast %210 : vector<1x1x14x12xf32> to vector<14x12xf32>
    %cst_320 = arith.constant dense<0.000000e+00> : vector<10x14xf32>
    %212 = tpu.matmul %209, %211, %cst_320 {dimension_numbers = #tpu.dot_dimension_numbers<[1], [1], [0], [0], [0, 0, 1, 0], [], []>} : vector<10x12xf32>, vector<14x12xf32>, vector<10x14xf32> -> vector<10x14xf32>
    %c1_321 = arith.constant 1 : index
    %c1_322 = arith.constant 1 : index
    %c0_323 = arith.constant 0 : index
    %c0_324 = arith.constant 0 : index
    %213 = vector.load %arg35[%c1_321, %c1_322, %c0_323, %c0_324] : memref<2x2x10x14xf32, #tpu.memory_space<vmem>>, vector<1x1x10x14xf32>
    %214 = vector.shape_cast %213 : vector<1x1x10x14xf32> to vector<10x14xf32>
    %215 = vector.shape_cast %212 : vector<10x14xf32> to vector<1x1x10x14xf32>
    tpu.vector_store %arg35[%c1_321, %c1_322, %c0_323, %c0_324], %215 {strides = array<i32>} : memref<2x2x10x14xf32, #tpu.memory_space<vmem>>, vector<1x1x10x14xf32>,
    return
  }
}

</mosaic_0001>

<bundles_post_ra>
// kernel: model_forward.1
= control target key start
LH: loop header
LB: loop body
LE: loop exit
PB: predicated region body
PF: predicated region fallthrough
CT: control target
= control target key end

     0   :  { %s3821_s6 = smov 1   ;;  %s3822_s10 = smov 2   ;;  %s4467_s0 = inlined_call_operand.smem [shape: u32[36], index: -1, kind: input, shape index: {}] }
   0x1   :  { %s3881_s5 = sld [smem:[%s4467_s0]]   ;;  %s3823_s14 = smov 3  }
   0x2   :  { %s3886_s9 = sld [smem:[%s4467_s0 + %s3821_s6]]   ;;  %s3824_s18 = smov 4  }
   0x3   :  { %s3891_s13 = sld [smem:[%s4467_s0 + %s3822_s10]]   ;;  %s3825_s22 = smov 5  }
   0x4   :  { %s3896_s17 = sld [smem:[%s4467_s0 + %s3823_s14]]   ;;  %s3826_s26 = smov 6  }
   0x5   :  { %s3901_s21 = sld [smem:[%s4467_s0 + %s3824_s18]]   ;;  %s3827_s30 = smov 7  }
   0x6   :  { %s3906_s25 = sld [smem:[%s4467_s0 + %s3825_s22]]   ;;  %s3828_s4 = smov 8  }
   0x7   :  { %s3911_s29 = sld [smem:[%s4467_s0 + %s3826_s26]]   ;;  %s3829_s10 = smov 9  }
   0x8   :  { %s3916_s3 = sld [smem:[%s4467_s0 + %s3827_s30]]   ;;  %s3830_s15 = smov 10  }
   0x9   :  { %s3921_s8 = sld [smem:[%s4467_s0 + %s3828_s4]]   ;;  %s3831_s20 = smov 11  }
   0xa   :  { %s3926_s14 = sld [smem:[%s4467_s0 + %s3829_s10]]   ;;  %s3832_s26 = smov 12  }
   0xb   :  { %s3931_s19 = sld [smem:[%s4467_s0 + %s3830_s15]]   ;;  %s3833_s1 = smov 13  }
   0xc   :  { %s3936_s24 = sld [smem:[%s4467_s0 + %s3831_s20]]   ;;  %s3834_s7 = smov 14  }
   0xd   :  { %s3941_s30 = sld [smem:[%s4467_s0 + %s3832_s26]]   ;;  %s3835_s15 = smov 15  }
   0xe   :  { %s3946_s6 = sld [smem:[%s4467_s0 + %s3833_s1]]   ;;  %s3836_s22 = smov 16  }
   0xf   :  { %s3951_s12 = sld [smem:[%s4467_s0 + %s3834_s7]]   ;;  %s3837_s28 = smov 17  }
  0x10   :  { %s3956_s20 = sld [smem:[%s4467_s0 + %s3835_s15]]   ;;  %s3838_s7 = smov 18  }
  0x11   :  { %s3961_s27 = sld [smem:[%s4467_s0 + %s3836_s22]]   ;;  %s3839_s15 = smov 19  }
  0x12   :  { %s3966_s4 = sld [smem:[%s4467_s0 + %s3837_s28]]   ;;  %s3840_s22 = smov 20  }
  0x13   :  { %s3841_s28 = smov 21  }
  0x15   :  { %4485 = sst [smem:[#allocation24_spill]] %s3951_s12 }
  0x16   :  { %4486 = sst [smem:[#allocation25_spill]] %s3956_s20 }
  0x17   :  { %4487 = sst [smem:[#allocation26_spill]] %s3961_s27 }
  0x18   :  { %4488 = sst [smem:[#allocation27_spill]] %s3966_s4 }
  0x19   :  { %s3971_s12 = sld [smem:[%s4467_s0 + %s3838_s7]]   ;;  %s3842_s7 = smov 22  }
  0x1a   :  { %s3976_s20 = sld [smem:[%s4467_s0 + %s3839_s15]]   ;;  %s3843_s15 = smov 23  }
  0x1b   :  { %s3981_s27 = sld [smem:[%s4467_s0 + %s3840_s22]]   ;;  %s3844_s22 = smov 24  }
  0x1c   :  { %s3986_s4 = sld [smem:[%s4467_s0 + %s3841_s28]]   ;;  %s3845_s28 = smov 25  }
  0x1f   :  { %4489 = sst [smem:[#allocation28_spill]] %s3971_s12 }
  0x20   :  { %4490 = sst [smem:[#allocation29_spill]] %s3976_s20 }
  0x21   :  { %4491 = sst [smem:[#allocation30_spill]] %s3981_s27 }
  0x22   :  { %4492 = sst [smem:[#allocation31_spill]] %s3986_s4 }
  0x23   :  { %s3991_s12 = sld [smem:[%s4467_s0 + %s3842_s7]]   ;;  %s3846_s7 = smov 26  }
  0x24   :  { %s3996_s20 = sld [smem:[%s4467_s0 + %s3843_s15]]   ;;  %s3847_s15 = smov 27  }
  0x25   :  { %s4001_s27 = sld [smem:[%s4467_s0 + %s3844_s22]]   ;;  %s3848_s22 = smov 28  }
  0x26   :  { %s4006_s4 = sld [smem:[%s4467_s0 + %s3845_s28]]   ;;  %s3849_s28 = smov 29  }
  0x29   :  { %4493 = sst [smem:[#allocation32_spill]] %s3991_s12 }
  0x2a   :  { %4494 = sst [smem:[#allocation33_spill]] %s3996_s20 }
  0x2b   :  { %4495 = sst [smem:[#allocation34_spill]] %s4001_s27 }
  0x2c   :  { %4496 = sst [smem:[#allocation35_spill]] %s4006_s4 }
  0x2d   :  { %s4011_s12 = sld [smem:[%s4467_s0 + %s3846_s7]]   ;;  %s3850_s7 = smov 30  }
  0x2e   :  { %s4016_s20 = sld [smem:[%s4467_s0 + %s3847_s15]]   ;;  %s3851_s15 = smov 31  }
  0x2f   :  { %s4021_s27 = sld [smem:[%s4467_s0 + %s3848_s22]]   ;;  %s3852_s22 = smov 32  }
  0x30   :  { %s4026_s4 = sld [smem:[%s4467_s0 + %s3849_s28]]   ;;  %s3853_s28 = smov 33  }
  0x33   :  { %4497 = sst [smem:[#allocation36_spill]] %s4011_s12 }
  0x34   :  { %4498 = sst [smem:[#allocation37_spill]] %s4016_s20 }
  0x35   :  { %4499 = sst [smem:[#allocation38_spill]] %s4021_s27 }
  0x36   :  { %4500 = sst [smem:[#allocation39_spill]] %s4026_s4 }
  0x37   :  { %s4031_s12 = sld [smem:[%s4467_s0 + %s3850_s7]]   ;;  %s3854_s7 = smov 34  }
  0x38   :  { %s4036_s20 = sld [smem:[%s4467_s0 + %s3851_s15]]   ;;  %s3855_s15 = smov 35  }
  0x39   :  { %s4041_s27 = sld [smem:[%s4467_s0 + %s3852_s22]]  }
  0x3a   :  { %s4046_s4 = sld [smem:[%s4467_s0 + %s3853_s28]]  }
  0x3d   :  { %4501 = sst [smem:[#allocation40_spill]] %s4031_s12 }
  0x3e   :  { %4502 = sst [smem:[#allocation41_spill]] %s4036_s20 }
  0x3f   :  { %s4051_s12 = sld [smem:[%s4467_s0 + %s3854_s7]]  }
  0x40   :  { %s4056_s20 = sld [smem:[%s4467_s0 + %s3855_s15]]  }
  0x41   :  { %77 = vsyncpa [#allocation3], 0 }
  0x42   :  { %78 = vsyncpa [#allocation5], 0 }
  0x43   :  { %79 = vsyncpa [#allocation8], 0 }
  0x44   :  { %80 = vsyncpa [#allocation11], 0 }
  0x45   :  { %81 = vsyncpa [#allocation14], 0  ;;  %v132_v0 = vld [vmem:[%s3886_s9] sm:$0xff]  ;;  %v133_v1 = vld [vmem:[%s3886_s9 + $0x8] sm:$0xf]  ;;  %vm134_vm0 = vcmask 130048  }
  0x46   :  { %v217_v2 = vld [vmem:[%s3896_s17] sm:$0xff]  ;;  %v3856_v3 = vmov 0.0|0.0   ;;  %v3418_v4 = vpack.c.bf16 %v133_v1, %v132_v0  ;;  %vm4065_vm1 = vmpackc.low %vm134_vm0, %vm134_vm0  ;;  %v218_v6 = vld [vmem:[%s3896_s17 + $0x8] sm:$0xf]  ;;  %vm3857_vm2 = vmmov 0   ;;  %v3858_v8 = vmov 0.0  }
  0x47   :  { %3417 = vmatprep.subr.bf16.mxu0 %v3856_v3  ;;  %3421 = vmatprep.subr.bf16.mxu1 %v3856_v3  ;;  %v3422_v7 = vpack.c.bf16 %v218_v6, %v217_v2  ;;  %v2963_v9 = vld [vmem:[%s3896_s17 + $0x10] sm:$0xff]  ;;  %v2964_v10 = vld [vmem:[%s3896_s17 + $0x18] sm:$0xf]  ;;  %v386_v11 = vld [vmem:[%s3906_s25] sm:$0xff] }
  0x48   :  { %3211 = vmatprep.mubr.msk.f32.mxu0 %vm3857_vm2, %v3858_v8  ;;  %3218 = vmatprep.mubr.msk.f32.mxu1 %vm3857_vm2, %v3858_v8  ;;  %v387_v12 = vld [vmem:[%s3906_s25 + $0x8] sm:$0xf]  ;;  %v131_v13 = vld [vmem:[%s3881_s5] sm:$0xff]  ;;  %v3426_v14 = vpack.c.bf16 %v2964_v10, %v2963_v9  ;;  %v2972_v17 = vld [vmem:[%s3906_s25 + $0x10] sm:$0xff] }
  0x49   :  { %3420 = vmatpush3.bf16.xpose.msk.msra.mxu0 %vm4065_vm1, %v3418_v4  ;;  %3424 = vmatpush3.bf16.xpose.msk.msra.mxu1 %vm4065_vm1, %v3422_v7  ;;  %v216_v15 = vld [vmem:[%s3891_s13] sm:$0xff]  ;;  %v3430_v16 = vpack.c.bf16 %v387_v12, %v386_v11  ;;  %v2973_v18 = vld [vmem:[%s3906_s25 + $0x18] sm:$0xf]  ;;  %v2979_v20 = vld [vmem:[%s3906_s25 + $0x28] sm:$0xf] }
  0x4a   :  { %3425 = vmatprep.subr.bf16.mxu0 %v3856_v3  ;;  %3429 = vmatprep.subr.bf16.mxu1 %v3856_v3  ;;  %v2978_v19 = vld [vmem:[%s3906_s25 + $0x20] sm:$0xff]  ;;  %v2962_v21 = vld [vmem:[%s3891_s13 + $0x8] sm:$0xff]  ;;  %v3434_v22 = vpack.c.bf16 %v2973_v18, %v2972_v17  ;;  %v2984_v25 = vld [vmem:[%s3906_s25 + $0x30] sm:$0xff] }
  0x4b   :  { %v385_v23 = vld [vmem:[%s3901_s21] sm:$0xff]  ;;  %v3438_v24 = vpack.c.bf16 %v2979_v20, %v2978_v19  ;;  %v2985_v26 = vld [vmem:[%s3906_s25 + $0x38] sm:$0xf]  ;;  %v2991_v28 = vld [vmem:[%s3906_s25 + $0x48] sm:$0xf] }
  0x4c   :  { %v2990_v27 = vld [vmem:[%s3906_s25 + $0x40] sm:$0xff]  ;;  %v2971_v29 = vld [vmem:[%s3901_s21 + $0x8] sm:$0xff]  ;;  %v3442_v30 = vpack.c.bf16 %v2985_v26, %v2984_v25  ;;  %v2977_v31 = vld [vmem:[%s3901_s21 + $0x10] sm:$0xff] }
  0x4d   :  { %v3446_v32 = vpack.c.bf16 %v2991_v28, %v2990_v27  ;;  %v2996_v33 = vld [vmem:[%s3906_s25 + $0x50] sm:$0xff]  ;;  %v2997_v34 = vld [vmem:[%s3906_s25 + $0x58] sm:$0xf]  ;;  %v899_v35 = vld [vmem:[%s3916_s3] sm:$0xff] }
  0x4e   :  { %v900_v36 = vld [vmem:[%s3916_s3 + $0x8] sm:$0xf] }
  0x50   :  { %3212 = vmatmul.mubr.msk.f32.vlgmr.msra.gmra.mrb[0].mxu0 %vm134_vm0, %v131_v13  ;;  %3219 = vmatmul.mubr.msk.f32.vlgmr.msra.gmra.mrb[0].mxu1 %vm134_vm0, %v216_v15 }
  0x51   :  { %3428 = vmatpush3.bf16.xpose.msk.msra.mxu0 %vm4065_vm1, %v3426_v14  ;;  %3432 = vmatpush3.bf16.xpose.msk.msra.mxu1 %vm4065_vm1, %v3430_v16 }
  0x52   :  { %3225 = vmatprep.mubr.msk.f32.mxu0 %vm3857_vm2, %v3858_v8  ;;  %3232 = vmatprep.mubr.msk.f32.mxu1 %vm3857_vm2, %v3858_v8 }
  0x53   :  { %3433 = vmatprep.subr.bf16.mxu0 %v3856_v3  ;;  %3437 = vmatprep.subr.bf16.mxu1 %v3856_v3 }
  0x58   :  { %3226 = vmatmul.mubr.msk.f32.vlgmr.msra.gmra.mrb[2].mxu0 %vm134_vm0, %v2962_v21  ;;  %3233 = vmatmul.mubr.msk.f32.vlgmr.msra.gmra.mrb[2].mxu1 %vm134_vm0, %v385_v23 }
  0x59   :  { %3436 = vmatpush3.bf16.xpose.msk.msra.mxu0 %vm4065_vm1, %v3434_v22  ;;  %3440 = vmatpush3.bf16.xpose.msk.msra.mxu1 %vm4065_vm1, %v3438_v24 }
  0x5a   :  { %3239 = vmatprep.mubr.msk.f32.mxu0 %vm3857_vm2, %v3858_v8  ;;  %3246 = vmatprep.mubr.msk.f32.mxu1 %vm3857_vm2, %v3858_v8 }
  0x5b   :  { %3441 = vmatprep.subr.bf16.mxu0 %v3856_v3  ;;  %3445 = vmatprep.subr.bf16.mxu1 %v3856_v3 }
  0x60   :  { %3240 = vmatmul.mubr.msk.f32.vlgmr.msra.gmra.mrb[4].mxu0 %vm134_vm0, %v2971_v29  ;;  %3247 = vmatmul.mubr.msk.f32.vlgmr.msra.gmra.mrb[4].mxu1 %vm134_vm0, %v2977_v31 }
  0x61   :  { %3444 = vmatpush3.bf16.xpose.msk.msra.mxu0 %vm4065_vm1, %v3442_v30  ;;  %3448 = vmatpush3.bf16.xpose.msk.msra.mxu1 %vm4065_vm1, %v3446_v32 }
  0x62   :  { %3253 = vmatprep.mubr.msk.f32.mxu0 %vm3857_vm2, %v3858_v8  ;;  %3260 = vmatprep.mubr.msk.f32.mxu1 %vm3857_vm2, %v3858_v8 }
  0x63   :  { %3449 = vmatprep.subr.bf16.mxu0 %v3856_v3  ;;  %3453 = vmatprep.subr.bf16.mxu1 %v3856_v3 }
  0x64   :  { %82 = vsyncpa [#allocation17], 0  ;;  %v2983_v37 = vld [vmem:[%s3901_s21 + $0x18] sm:$0xff]  ;;  %v3450_v38 = vpack.c.bf16 %v2997_v34, %v2996_v33  ;;  %v2989_v39 = vld [vmem:[%s3901_s21 + $0x20] sm:$0xff]  ;;  %v3454_v40 = vpack.c.bf16 %v900_v36, %v899_v35  ;;  %s4505_s0 = sld [smem:[#allocation25_spill]]  ;;  %s4506_s5 = sld [smem:[#allocation27_spill]] }
  0x65   :  { %v983_v41 = vld [vmem:[%s3926_s14] sm:$0xff]  ;;  %v984_v42 = vld [vmem:[%s3926_s14 + $0x8] sm:$0xf]  ;;  %v3007_v43 = vld [vmem:[%s3926_s14 + $0x10] sm:$0xff]  ;;  %s4507_s9 = sld [smem:[#allocation24_spill]]  ;;  %s4508_s13 = sld [smem:[#allocation26_spill]] }
  0x66   :  { %v3008_v44 = vld [vmem:[%s3926_s14 + $0x18] sm:$0xf]  ;;  %v1152_v45 = vld [vmem:[%s3936_s24] sm:$0xff]  ;;  %v1153_v46 = vld [vmem:[%s3936_s24 + $0x8] sm:$0xf]  ;;  %v3458_v48 = vpack.c.bf16 %v984_v42, %v983_v41  ;;  %s4509_s17 = sld [smem:[#allocation29_spill]] }
  0x67   :  { %v2995_v47 = vld [vmem:[%s3901_s21 + $0x28] sm:$0xff]  ;;  %v1249_v49 = vld [vmem:[%s3946_s6] sm:$0xff]  ;;  %v3462_v52 = vpack.c.bf16 %v3008_v44, %v3007_v43  ;;  %v3465_v53 = vpack.c.bf16 %v1153_v46, %v1152_v45  ;;  %v1245_v2 = vld [vmem:[%s3941_s30 + $0x10] sm:$0xff]  ;;  %s4510_s21 = sld [smem:[#allocation31_spill]]  ;;  %s4511_s25 = sld [smem:[#allocation33_spill]]  ;;  %vm2053_vm3 = vcmask 162816  }
  0x68   :  { %3254 = vmatmul.mubr.msk.f32.vlgmr.msra.gmra.mrb[6].mxu0 %vm134_vm0, %v2983_v37  ;;  %3261 = vmatmul.mubr.msk.f32.vlgmr.msra.gmra.mrb[6].mxu1 %vm134_vm0, %v2989_v39  ;;  %v1250_v50 = vld [vmem:[%s3946_s6 + $0x8] sm:$0xf]  ;;  %v898_v51 = vld [vmem:[%s3911_s29] sm:$0x1]  ;;  %v1246_v4 = vld [vmem:[%s3941_s30 + $0x18] sm:$0xff]  ;;  %s4512_s29 = sld [smem:[#allocation28_spill]] }
  0x69   :  { %3452 = vmatpush3.bf16.xpose.msk.msra.mxu0 %vm4065_vm1, %v3450_v38  ;;  %3456 = vmatpush3.bf16.xpose.msk.msra.mxu1 %vm4065_vm1, %v3454_v40  ;;  %v3471_v54 = vpack.c.bf16 %v1250_v50, %v1249_v49  ;;  %v982_v55 = vld [vmem:[%s3921_s8] sm:$0xff]  ;;  %v1151_v62 = vld [vmem:[%s3931_s19 + $0x8] sm:$0xff]  ;;  %vm3511_vm4 = vmpackc.low %vm2053_vm3, %vm2053_vm3  ;;  %s4513_s3 = sld [smem:[#allocation30_spill]]  ;;  %vm2137_vm5 = vcmask 195584   ;;  %vm214_vm6 = vcmask 97280   ;;  %s4514_s8 = sld [smem:[#allocation32_spill]] }
  0x6a   :  { %3267 = vmatprep.mubr.msk.f32.mxu0 %vm3857_vm2, %v3858_v8  ;;  %3274 = vmatprep.mubr.msk.f32.mxu1 %vm3857_vm2, %v3858_v8  ;;  %v1150_v56 = vld [vmem:[%s3931_s19] sm:$0xff]  ;;  %v1378_v59 = vld [vmem:[%s4505_s0 + $0x8] sm:$0xf]  ;;  %v3027_v60 = vld [vmem:[%s4505_s0 + $0x10] sm:$0xff]  ;;  %s3859_s14 = smov [#allocation2]  }
  0x6b   :  { %3457 = vmatprep.subr.bf16.mxu0 %v3856_v3  ;;  %3461 = vmatprep.subr.bf16.mxu1 %v3856_v3  ;;  %v1243_v57 = vld [vmem:[%s3941_s30] sm:$0xff]  ;;  %v3028_v61 = vld [vmem:[%s4505_s0 + $0x18] sm:$0xf]  ;;  %v1244_v0 = vld [vmem:[%s3941_s30 + $0x8] sm:$0xff]  ;;  %s2769_s19 = sshll.u32 %s3859_s14, 4  ;;  %s2770_s19 = int_to_ptr.vmem [resolvable:$true] %s2769_s19 }
  0x6c   :  { %v1377_v58 = vld [vmem:[%s4505_s0] sm:$0xff]  ;;  %v3482_v1 = vpack.c.bf16 %v3028_v61, %v3027_v60  ;;  %v1546_v7 = vld [vmem:[%s4506_s5 + $0x8] sm:$0xf]  ;;  %v3035_v13 = vld [vmem:[%s4506_s5 + $0x10] sm:$0xff]  ;;  %s3589_s24 = scalar_lea.vmem %s2770_s19, 128  ;;  %p3594_p1 = scmp.lt.s32.totalorder %s2770_s19, %s2770_s19 }
  0x6d   :  { %v3478_v63 = vpack.c.bf16 %v1378_v59, %v1377_v58  ;;  %v1545_v6 = vld [vmem:[%s4506_s5] sm:$0xff]  ;;  %v1248_v12 = vld [vmem:[%s3941_s30 + $0x28] sm:$0xff]  ;;  %v3036_v14 = vld [vmem:[%s4506_s5 + $0x18] sm:$0xf]  ;;  %p3590_p0 = scmp.ne.s32.totalorder %s2770_s19, %s3589_s24  ;;  %p3595_p2 = scmp.lt.s32.totalorder %s3589_s24, %s3589_s24 }
  0x6e   :  { %v1247_v9 = vld [vmem:[%s3941_s30 + $0x20] sm:$0xff]  ;;  %v3486_v11 = vpack.c.bf16 %v1546_v7, %v1545_v6  ;;  %v3490_v16 = vpack.c.bf16 %v3036_v14, %v3035_v13  ;;  %v3041_v18 = vld [vmem:[%s4506_s5 + $0x28] sm:$0xf]  ;;  %v3051_v23 = vld [vmem:[%s4506_s5 + $0x18] sm:$0xf] }
  0x6f   :  { %v1376_v10 = vld [vmem:[%s4507_s9] sm:$0x1]  ;;  %v1800_v21 = vld [vmem:[%s4506_s5 + $0x8] sm:$0xf]  ;;  %v3502_v24 = vpack.c.bf16 %v3051_v23, %v3035_v13  ;;  %v3082_v5 = vld [vmem:[%s4511_s25 + $0x10] sm:$0xff]  ;;  %p3596_p3 = por %p3595_p2, %p3594_p1 }
  0x70   :  { %3268 = vmatmul.mubr.msk.f32.vlgmr.msra.gmra.mrb[8].mxu0 %vm134_vm0, %v2995_v47  ;;  %3275 = vmatmul.mubr.msk.f32.vlgmr.msra.gmra.mrb[8].mxu1 %vm134_vm0, %v898_v51  ;;  %v1459_v15 = vld [vmem:[%s4507_s9] sm:$0x1]  ;;  %v3498_v22 = vpack.c.bf16 %v1800_v21, %v1545_v6  ;;  %v3057_v25 = vld [vmem:[%s4506_s5 + $0x28] sm:$0xf]  ;;  %v3083_v31 = vld [vmem:[%s4511_s25 + $0x18] sm:$0x3f] }
  0x71   :  { %3460 = vmatpush3.bf16.xpose.msk.msra.mxu0 %vm4065_vm1, %v3458_v48  ;;  %3464 = vmatpush3.bf16.xpose.msk.msra.mxu1 %vm4065_vm1, %v3462_v52  ;;  %v3040_v17 = vld [vmem:[%s4506_s5 + $0x20] sm:$0xff]  ;;  %v3045_v26 = vld [vmem:[%s4508_s13 + $0x8] sm:$0xff]  ;;  %v3072_v37 = vld [vmem:[%s4510_s21 + $0x10] sm:$0x3f]  ;;  %v3519_v38 = vpack.c.bf16 %v3083_v31, %v3082_v5  ;;  %p3597_p4 = pnand %p3596_p3, %p3590_p0 }
  0x72   :  { %3281 = vmatprep.mubr.msk.f32.mxu0 %vm3857_vm2, %v3858_v8  ;;  %3288 = vmatprep.mubr.msk.f32.mxu1 %vm3857_vm2, %v3858_v8  ;;  %v1544_v19 = vld [vmem:[%s4508_s13] sm:$0xff]  ;;  %v3494_v20 = vpack.c.bf16 %v3041_v18, %v3040_v17  ;;  %v3506_v27 = vpack.c.bf16 %v3057_v25, %v3040_v17  ;;  %v2052_v29 = vld [vmem:[%s4509_s17 + $0x8] sm:$0x1]  ;;  %vm4289_vm7 = vmpackc.low %vm214_vm6, %vm214_vm6 }
  0x73   :  { %3467 = vmatprep.subr.msk.bf16.mxu0 %vm4065_vm1, %v3465_v53  ;;  %3473 = vmatprep.subr.msk.bf16.mxu1 %vm4065_vm1, %v3471_v54  ;;  %v2051_v28 = vld [vmem:[%s4509_s17] sm:$0xff]  ;;  %v2383_v34 = vld [vmem:[%s4511_s25 + $0x8] sm:$0x3f]  ;;  %v3102_v41 = vld [vmem:[%s4511_s25 + $0x30] sm:$0xff] }
  0x74   :  { %v3510_v30 = vpack.c.bf16 %v2052_v29, %v2051_v28  ;;  %v2050_v32 = vld [vmem:[%s4512_s29] sm:$0x7f]  ;;  %v3067_v36 = vld [vmem:[%s4510_s21 + $0x8] sm:$0x3f]  ;;  %v3103_v42 = vld [vmem:[%s4511_s25 + $0x38] sm:$0x3f] }
  0x75   :  { %v2382_v33 = vld [vmem:[%s4511_s25] sm:$0xff]  ;;  %v3066_v43 = vld [vmem:[%s4513_s3 + $0x8] sm:$0x1f]  ;;  %v3071_v46 = vld [vmem:[%s4513_s3 + $0x10] sm:$0x1f]  ;;  %v3531_v48 = vpack.c.bf16 %v3103_v42, %v3102_v41 }
  0x76   :  { %v2135_v35 = vld [vmem:[%s4513_s3] sm:$0x1f]  ;;  %v3513_v40 = vpack.c.bf16 %v2383_v34, %v2382_v33  ;;  %v3093_v45 = vld [vmem:[%s4511_s25 + $0x28] sm:$0x3f]  ;;  %v3080_v49 = vld [vmem:[%s4514_s8 + $0x10] sm:$0xff] }
  0x77   :  { %v3092_v44 = vld [vmem:[%s4511_s25 + $0x20] sm:$0xff]  ;;  %v3081_v51 = vld [vmem:[%s4514_s8 + $0x18] sm:$0x3]  ;;  %v3100_v52 = vld [vmem:[%s4514_s8 + $0x30] sm:$0xff] }
  0x78   :  { %3282 = vmatmul.mubr.msk.f32.vlgmr.msra.gmra.mrb[10].mxu0 %vm134_vm0, %v982_v55  ;;  %3289 = vmatmul.mubr.msk.f32.vlgmr.msra.gmra.mrb[10].mxu1 %vm134_vm0, %v982_v55  ;;  %v2380_v47 = vld [vmem:[%s4514_s8] sm:$0xff]  ;;  %v3525_v50 = vpack.c.bf16 %v3093_v45, %v3092_v44  ;;  %v3101_v55 = vld [vmem:[%s4514_s8 + $0x38] sm:$0x3] }
  0x79   :  { %3470 = vmatpush3.bf16.xpose.msk.msra.mxu0 %vm4065_vm1, %v3465_v53  ;;  %3476 = vmatpush3.bf16.xpose.msk.msra.mxu1 %vm4065_vm1, %v3471_v54  ;;  %v3090_v53 = vld [vmem:[%s4514_s8 + $0x20] sm:$0xff]  ;;  %v3091_v54 = vld [vmem:[%s4514_s8 + $0x28] sm:$0x3] }
  0x7a   :  { %3295 = vmatprep.mubr.msk.f32.mxu0 %vm134_vm0, %v1150_v56  ;;  %3302 = vmatprep.mubr.msk.f32.mxu1 %vm134_vm0, %v1243_v57 }
  0x7b   :  { %3477 = vmatprep.subr.bf16.mxu0 %v3856_v3  ;;  %3481 = vmatprep.subr.bf16.mxu1 %v3856_v3 }
  0x80   :  { %3296 = vmatmul.mubr.msk.f32.vlgmr.msra.gmra.mrb[12].mxu0 %vm134_vm0, %v1151_v62  ;;  %3303 = vmatmul.mubr.msk.f32.vlgmr.msra.gmra.mrb[12].mxu1 %vm134_vm0, %v1244_v0 }
  0x81   :  { %3480 = vmatpush3.bf16.xpose.msk.msra.mxu0 %vm4065_vm1, %v3478_v63  ;;  %3484 = vmatpush3.bf16.xpose.msk.msra.mxu1 %vm4065_vm1, %v3482_v1 }
  0x82   :  { %3305 = vmatprep.mubr.msk.f32.mxu1 %vm134_vm0, %v1245_v2  ;;  %3315 = vmatprep.mubr.msk.f32.mxu0 %vm3857_vm2, %v3858_v8 }
  0x83   :  { %3485 = vmatprep.subr.bf16.mxu0 %v3856_v3  ;;  %3489 = vmatprep.subr.bf16.mxu1 %v3856_v3 }
  0x84   :  { %3306 = vmatmul.mubr.msk.f32.gmra.mrb[14].mxu1 %vm134_vm0, %v1246_v4 }
  0x85   :  { %3308 = vmatprep.mubr.msk.f32.mxu1 %vm134_vm0, %v1247_v9 }
  0x88   :  { %3316 = vmatmul.mubr.msk.f32.vlgmr.msra.gmra.mrb[14].mxu0 %vm134_vm0, %v1376_v10  ;;  %3309 = vmatmul.mubr.msk.f32.gmra.mrb[16].mxu1 %vm134_vm0, %v1248_v12 }
  0x89   :  { %3488 = vmatpush3.bf16.xpose.msk.msra.mxu0 %vm4065_vm1, %v3486_v11  ;;  %3322 = vmatprep.mubr.msk.f32.mxu1 %vm3857_vm2, %v3858_v8 }
  0x8a   :  { %3329 = vmatprep.mubr.msk.f32.mxu0 %vm3857_vm2, %v3858_v8  ;;  %3493 = vmatprep.subr.bf16.mxu0 %v3856_v3 }
  0x8c   :  { %3323 = vmatmul.mubr.msk.f32.vlgmr.msra.gmra.mrb[18].mxu1 %vm134_vm0, %v1459_v15 }
  0x8d   :  { %3492 = vmatpush3.bf16.xpose.msk.msra.mxu1 %vm4065_vm1, %v3490_v16  ;;  %3336 = vmatprep.mubr.msk.f32.mxu1 %vm3857_vm2, %v3858_v8 }
  0x8e   :  { %3497 = vmatprep.subr.bf16.mxu1 %v3856_v3 }
  0x90   :  { %3330 = vmatmul.mubr.msk.f32.vlgmr.msra.gmra.mrb[16].mxu0 %vm134_vm0, %v1544_v19 }
  0x91   :  { %3496 = vmatpush3.bf16.xpose.msk.msra.mxu0 %vm4065_vm1, %v3494_v20  ;;  %3343 = vmatprep.mubr.msk.f32.mxu0 %vm3857_vm2, %v3858_v8 }
  0x92   :  { %3501 = vmatprep.subr.bf16.mxu0 %v3856_v3 }
  0x94   :  { %3337 = vmatmul.mubr.msk.f32.vlgmr.msra.gmra.mrb[20].mxu1 %vm134_vm0, %v1544_v19 }
  0x95   :  { %3500 = vmatpush3.bf16.xpose.msk.msra.mxu1 %vm4065_vm1, %v3498_v22  ;;  %3350 = vmatprep.mubr.msk.f32.mxu1 %vm3857_vm2, %v3858_v8 }
  0x96   :  { %3505 = vmatprep.subr.bf16.mxu1 %v3856_v3 }
  0x98   :  { %3344 = vmatmul.mubr.msk.f32.vlgmr.msra.gmra.mrb[18].mxu0 %vm134_vm0, %v1544_v19 }
  0x99   :  { %3504 = vmatpush3.bf16.xpose.msk.msra.mxu0 %vm4065_vm1, %v3502_v24  ;;  %3357 = vmatprep.mubr.msk.f32.mxu0 %vm3857_vm2, %v3858_v8 }
  0x9a   :  { %3509 = vmatprep.subr.bf16.mxu0 %v3856_v3  ;;  %v2136_v3 = vld [vmem:[%s4510_s21] sm:$0x3f] }
  0x9c   :  { %3351 = vmatmul.mubr.msk.f32.vlgmr.msra.gmra.mrb[22].mxu1 %vm134_vm0, %v3045_v26 }
  0x9d   :  { %3508 = vmatpush3.bf16.xpose.msk.msra.mxu1 %vm4065_vm1, %v3506_v27  ;;  %3364 = vmatprep.mubr.msk.f32.mxu1 %vm3857_vm2, %v3858_v8 }
  0x9e   :  { %3374 = vmatprep.subr.mxu1 %v3858_v8 }
  0xa0   :  { %3358 = vmatmul.mubr.msk.f32.vlgmr.msra.gmra.mrb[20].mxu0 %vm134_vm0, %v3045_v26 }
  0xa1   :  { %3512 = vmatpush3.bf16.xpose.msk.msra.mxu0 %vm3511_vm4, %v3510_v30  ;;  %3371 = vmatprep.mubr.msk.f32.mxu0 %vm3857_vm2, %v3858_v8 }
  0xa2   :  { %3379 = vmatprep.subr.mxu0 %v3858_v8 }
  0xa4   :  { %3365 = vmatmul.mubr.msk.f32.vlgmr.msra.gmra.mrb[24].mxu1 %vm134_vm0, %v3045_v26 }
  0xa5   :  { %3375 = vmatpush3.xpose.msk.msra.mxu1 %vm2137_vm5, %v2136_v3  ;;  %3376 = vmatprep.mubr.msk.f32.mxu1 %vm3857_vm2, %v3858_v8 }
  0xa6   :  { %3384 = vmatprep.subr.mxu1 %v3858_v8 }
  0xa8   :  { %3372 = vmatmul.mubr.msk.f32.vlgmr.msra.gmra.mrb[22].mxu0 %vm2053_vm3, %v2050_v32  ;;  %3377 = vmatmul.mubr.msk.f32.vlgmr.msra.gmra.mrb[26].mxu1 %vm2137_vm5, %v2135_v35 }
  0xa9   :  { %3380 = vmatpush3.xpose.msk.msra.mxu0 %vm2137_vm5, %v3067_v36  ;;  %3385 = vmatpush3.xpose.msk.msra.mxu1 %vm2137_vm5, %v3072_v37 }
  0xaa   :  { %3381 = vmatprep.mubr.msk.f32.mxu0 %vm3857_vm2, %v3858_v8  ;;  %3386 = vmatprep.mubr.msk.f32.mxu1 %vm3857_vm2, %v3858_v8  ;;  %v2381_v8 = vld [vmem:[%s4514_s8 + $0x8] sm:$0x3] }
  0xab   :  { %3521 = vmatprep.subr.msk.bf16.mxu1 %vm4289_vm7, %v3519_v38  ;;  %3515 = vmatprep.subr.msk.bf16.mxu0 %vm4289_vm7, %v3513_v40 }
  0xac   :  { %3382 = vmatmul.mubr.msk.f32.vlgmr.msra.gmra.mrb[24].mxu0 %vm2137_vm5, %v3066_v43  ;;  %3387 = vmatmul.mubr.msk.f32.vlgmr.msra.gmra.mrb[28].mxu1 %vm2137_vm5, %v3071_v46 }
  0xad   :  { %3518 = vmatpush3.bf16.xpose.msk.msra.mxu0 %vm4289_vm7, %v3513_v40  ;;  %3524 = vmatpush3.bf16.xpose.msk.msra.mxu1 %vm4289_vm7, %v3519_v38 }
  0xae   :  { %3393 = vmatprep.mubr.msk.f32.mxu0 %vm214_vm6, %v2380_v47  ;;  %3400 = vmatprep.mubr.msk.f32.mxu1 %vm214_vm6, %v3080_v49 }
  0xaf   :  { %3533 = vmatprep.subr.msk.bf16.mxu1 %vm4289_vm7, %v3531_v48  ;;  %3527 = vmatprep.subr.msk.bf16.mxu0 %vm4289_vm7, %v3525_v50 }
  0xb4   :  { %3394 = vmatmul.mubr.msk.f32.vlgmr.msra.gmra.mrb[26].mxu0 %vm214_vm6, %v2381_v8  ;;  %3401 = vmatmul.mubr.msk.f32.vlgmr.msra.gmra.mrb[30].mxu1 %vm214_vm6, %v3081_v51 }
  0xb5   :  { %3530 = vmatpush3.bf16.xpose.msk.msra.mxu0 %vm4289_vm7, %v3525_v50  ;;  %3536 = vmatpush3.bf16.xpose.msk.msra.mxu1 %vm4289_vm7, %v3531_v48 }
  0xb6   :  { %3414 = vmatprep.mubr.msk.f32.mxu1 %vm214_vm6, %v3100_v52  ;;  %3407 = vmatprep.mubr.msk.f32.mxu0 %vm214_vm6, %v3090_v53 }
  0xbc   :  { %3408 = vmatmul.mubr.msk.f32.vlgmr.msra.gmra.mrb[28].mxu0 %vm214_vm6, %v3091_v54  ;;  %3415 = vmatmul.mubr.msk.f32.vlgmr.msra.gmra.mrb[32].mxu1 %vm214_vm6, %v3101_v55 }
 0x123   :  { %v210_v56 = vpop.f32.mrb[0].mxu0  ;;  %v294_v57 = vpop.f32.mrb[0].mxu1 }
 0x124   :  { %215 = vst.msk [vmem:[#allocation2] sm:$0xff] %vm214_vm6, %v210_v56  ;;  %v3213_v58 = vpop.f32.mrb[1].mxu0  ;;  %298 = vst.msk [vmem:[#allocation4] sm:$0xff] %vm214_vm6, %v294_v57  ;;  %v3220_v59 = vpop.f32.mrb[1].mxu1 }
 0x125   :  { %3600 = shalt.err (!%p3597_p4)
}
 0x126   :  { %s4517_s30 = sld [smem:[#allocation34_spill]] }
 0x12c   :  { %s3601_s6 = scalar_lea.hbm %s4517_s30, 128 }
 0x12d   :  { %p3602_p5 = scmp.ne.s32.totalorder %s4517_s30, %s3601_s6  ;;  %p3605_p6 = scmp.lt.u32.totalorder %s3601_s6, %s4517_s30 }
 0x12f   :  { %p3607_p7 = pnand %p3605_p6, %p3602_p5 }
 0x131   :  { %3610 = shalt.err (!%p3607_p7)
}
 0x132   :  { %2772 = dma.vmem_to_hbm [thread:$0]  %s2770_s19, 128, %s4517_s30, [#allocation3]   ;;  %v379_v60 = vpop.f32.mrb[2].mxu0  ;;  %v463_v61 = vpop.f32.mrb[2].mxu1 }
 0x133   :  { %s3860_s22 = smov [#allocation4]   ;;  %384 = vst.msk [vmem:[#allocation4 + $0x8] sm:$0xff] %vm214_vm6, %v379_v60  ;;  %v3227_v62 = vpop.f32.mrb[3].mxu0  ;;  %467 = vst.msk [vmem:[#allocation6] sm:$0xff] %vm214_vm6, %v463_v61  ;;  %v3234_v63 = vpop.f32.mrb[3].mxu1 }
 0x134   :  { %s2778_s23 = sshll.u32 %s3860_s22, 4  ;;  %s2779_s23 = int_to_ptr.vmem [resolvable:$true] %s2778_s23 }
 0x135   :  { %s3611_s26 = scalar_lea.vmem %s2779_s23, 256  ;;  %p3616_p9 = scmp.lt.s32.totalorder %s2779_s23, %s2779_s23 }
 0x136   :  { %p3612_p8 = scmp.ne.s32.totalorder %s2779_s23, %s3611_s26  ;;  %p3617_p10 = scmp.lt.s32.totalorder %s3611_s26, %s3611_s26 }
 0x138   :  { %p3618_p11 = por %p3617_p10, %p3616_p9 }
 0x13a   :  { %p3619_p12 = pnand %p3618_p11, %p3612_p8 }
 0x13c   :  { %3622 = shalt.err (!%p3619_p12)
}
 0x13d   :  { %s4518_s28 = sld [smem:[#allocation35_spill]] }
 0x143   :  { %s3623_s1 = scalar_lea.hbm %s4518_s28, 256 }
 0x144   :  { %p3624_p13 = scmp.ne.s32.totalorder %s4518_s28, %s3623_s1  ;;  %p3627_p0 = scmp.lt.u32.totalorder %s3623_s1, %s4518_s28 }
 0x146   :  { %p3629_p1 = pnand %p3627_p0, %p3624_p13 }
 0x148   :  { %3632 = shalt.err (!%p3629_p1)
}
 0x149   :  { %s3861_s2 = smov 128   ;;  %s3862_s7 = smov 8   ;;  %v548_v0 = vpop.f32.mrb[4].mxu0  ;;  %v634_v1 = vpop.f32.mrb[4].mxu1  ;;  %vm980_vm8 = vcmask 90112  }
 0x14a   :  { %2784 = dma.vmem_to_hbm [thread:$0]  %s2779_s23, 256, %s4518_s28, [#allocation5], %s3861_s2, %s3861_s2, %s3862_s7   ;;  %553 = vst.msk [vmem:[#allocation6 + $0x8] sm:$0xff] %vm214_vm6, %v548_v0  ;;  %v3241_v2 = vpop.f32.mrb[5].mxu0  ;;  %639 = vst.msk [vmem:[#allocation6 + $0x10] sm:$0xff] %vm214_vm6, %v634_v1  ;;  %v3248_v4 = vpop.f32.mrb[5].mxu1 }
 0x14b   :  { %v720_v6 = vpop.f32.mrb[6].mxu0  ;;  %v806_v7 = vpop.f32.mrb[6].mxu1  ;;  %s3863_s10 = smov [#allocation6]   ;;  %s3864_s15 = smov [#allocation7]  }
 0x14c   :  { %725 = vst.msk [vmem:[#allocation6 + $0x18] sm:$0xff] %vm214_vm6, %v720_v6  ;;  %v3255_v9 = vpop.f32.mrb[7].mxu0  ;;  %811 = vst.msk [vmem:[#allocation6 + $0x20] sm:$0xff] %vm214_vm6, %v806_v7  ;;  %v3262_v10 = vpop.f32.mrb[7].mxu1  ;;  %s2790_s11 = sshll.u32 %s3863_s10, 4  ;;  %s2803_s16 = sshll.u32 %s3864_s15, 4  ;;  %s2791_s11 = int_to_ptr.vmem [resolvable:$true] %s2790_s11  ;;  %s4359_s16 = int_to_ptr.vmem [resolvable:$true] %s2803_s16 }
 0x14d   :  { %v892_v11 = vpop.f32.mrb[8].mxu0  ;;  %v976_v12 = vpop.f32.mrb[8].mxu1  ;;  %s3633_s18 = scalar_lea.vmem %s2791_s11, 768  ;;  %p3638_p3 = scmp.lt.s32.totalorder %s2791_s11, %s2791_s11 }
 0x14e   :  { %897 = vst.msk [vmem:[#allocation6 + $0x28] sm:$0xff] %vm214_vm6, %v892_v11  ;;  %v3269_v13 = vpop.f32.mrb[9].mxu0  ;;  %v3276_v14 = vpop.f32.mrb[9].mxu1  ;;  %p3634_p2 = scmp.ne.s32.totalorder %s2791_s11, %s3633_s18  ;;  %p3639_p4 = scmp.lt.s32.totalorder %s3633_s18, %s3633_s18 }
 0x14f   :  { %981 = vst.msk [vmem:[#allocation7] sm:$0x1] %vm980_vm8, %v976_v12 }
 0x150   :  { %p3640_p5 = por %p3639_p4, %p3638_p3 }
 0x152   :  { %p3641_p6 = pnand %p3640_p5, %p3634_p2 }
 0x154   :  { %3644 = shalt.err (!%p3641_p6)
}
 0x155   :  { %s4519_s0 = sld [smem:[#allocation36_spill]] }
 0x15b   :  { %s3645_s5 = scalar_lea.hbm %s4519_s0, 768 }
 0x15c   :  { %p3646_p7 = scmp.ne.s32.totalorder %s4519_s0, %s3645_s5  ;;  %p3649_p8 = scmp.lt.u32.totalorder %s3645_s5, %s4519_s0 }
 0x15e   :  { %p3651_p9 = pnand %p3649_p8, %p3646_p7 }
 0x160   :  { %3654 = shalt.err (!%p3651_p9)
}
 0x161   :  { %2796 = dma.vmem_to_hbm [thread:$0]  %s2791_s11, 768, %s4519_s0, [#allocation5], %s3861_s2, %s3861_s2, %s3862_s7  }
 0x162   :  { %s3655_s9 = scalar_lea.vmem %s4359_s16, 16  ;;  %s3659_s13 = scalar_lea.vmem %s4359_s16, 32 }
 0x163   :  { %p3656_p10 = scmp.ne.s32.totalorder %s4359_s16, %s3655_s9  ;;  %p3660_p11 = scmp.lt.s32.totalorder %s4359_s16, %s4359_s16 }
 0x164   :  { %p3661_p12 = scmp.lt.s32.totalorder %s3659_s13, %s3655_s9 }
 0x166   :  { %p3662_p13 = por %p3661_p12, %p3660_p11 }
 0x168   :  { %p3663_p0 = pnand %p3662_p13, %p3656_p10 }
 0x16a   :  { %3666 = shalt.err (!%p3663_p0)
}
 0x16b   :  { %s4520_s17 = sld [smem:[#allocation37_spill]] }
 0x171   :  { %s3667_s21 = scalar_lea.hbm %s4520_s17, 16 }
 0x172   :  { %p3668_p1 = scmp.ne.s32.totalorder %s4520_s17, %s3667_s21  ;;  %p3671_p2 = scmp.lt.u32.totalorder %s3667_s21, %s4520_s17 }
 0x174   :  { %p3673_p3 = pnand %p3671_p2, %p3668_p1 }
 0x176   :  { %3676 = shalt.err (!%p3673_p3)
}
 0x177   :  { %2806 = dma.vmem_to_hbm [thread:$0]  %s4359_s16, 16, %s4520_s17, [#allocation8]   ;;  %v1060_v15 = vpop.f32.mrb[10].mxu0  ;;  %v1144_v16 = vpop.f32.mrb[10].mxu1 }
 0x178   :  { %s3865_s25 = smov [#allocation9]   ;;  %1064 = vst.msk [vmem:[#allocation9] sm:$0xff] %vm214_vm6, %v1060_v15  ;;  %v3283_v17 = vpop.f32.mrb[11].mxu0  ;;  %1149 = vst.msk [vmem:[#allocation9 + $0x8] sm:$0xff] %vm214_vm6, %v1144_v16  ;;  %v3290_v18 = vpop.f32.mrb[11].mxu1 }
 0x179   :  { %s2812_s29 = sshll.u32 %s3865_s25, 4  ;;  %s2813_s29 = int_to_ptr.vmem [resolvable:$true] %s2812_s29 }
 0x17a   :  { %s3677_s3 = scalar_lea.vmem %s2813_s29, 256  ;;  %p3682_p5 = scmp.lt.s32.totalorder %s2813_s29, %s2813_s29 }
 0x17b   :  { %p3678_p4 = scmp.ne.s32.totalorder %s2813_s29, %s3677_s3  ;;  %p3683_p6 = scmp.lt.s32.totalorder %s3677_s3, %s3677_s3 }
 0x17d   :  { %p3684_p7 = por %p3683_p6, %p3682_p5 }
 0x17f   :  { %p3685_p8 = pnand %p3684_p7, %p3678_p4 }
 0x181   :  { %3688 = shalt.err (!%p3685_p8)
}
 0x182   :  { %s4521_s8 = sld [smem:[#allocation38_spill]] }
 0x188   :  { %s3689_s14 = scalar_lea.hbm %s4521_s8, 256 }
 0x189   :  { %p3690_p9 = scmp.ne.s32.totalorder %s4521_s8, %s3689_s14  ;;  %p3693_p10 = scmp.lt.u32.totalorder %s3689_s14, %s4521_s8 }
 0x18b   :  { %p3695_p11 = pnand %p3693_p10, %p3690_p9 }
 0x18d   :  { %3698 = shalt.err (!%p3695_p11)
}
 0x18e   :  { %2818 = dma.vmem_to_hbm [thread:$0]  %s2813_s29, 256, %s4521_s8, [#allocation8], %s3861_s2, %s3861_s2, %s3862_s7   ;;  %v3297_v19 = vpop.f32.mrb[12].mxu0  ;;  %v3304_v20 = vpop.f32.mrb[12].mxu1 }
 0x18f   :  { %s3866_s19 = smov [#allocation10]   ;;  %1242 = vst.msk [vmem:[#allocation10 + $0x8] sm:$0xff] %vm214_vm6, %v3297_v19  ;;  %v1232_v21 = vpop.f32.mrb[13].mxu0  ;;  %1371 = vst.msk [vmem:[#allocation12 + $0x8] sm:$0xff] %vm214_vm6, %v3304_v20  ;;  %v1341_v22 = vpop.f32.mrb[13].mxu1 }
 0x190   :  { %s2824_s24 = sshll.u32 %s3866_s19, 4  ;;  %1241 = vst.msk [vmem:[#allocation10] sm:$0xff] %vm214_vm6, %v1232_v21  ;;  %1370 = vst.msk [vmem:[#allocation12] sm:$0xff] %vm214_vm6, %v1341_v22  ;;  %s2825_s24 = int_to_ptr.vmem [resolvable:$true] %s2824_s24 }
 0x191   :  { %s3699_s30 = scalar_lea.vmem %s2825_s24, 256  ;;  %p3704_p13 = scmp.lt.s32.totalorder %s2825_s24, %s2825_s24 }
 0x192   :  { %p3700_p12 = scmp.ne.s32.totalorder %s2825_s24, %s3699_s30  ;;  %p3705_p0 = scmp.lt.s32.totalorder %s3699_s30, %s3699_s30 }
 0x194   :  { %p3706_p1 = por %p3705_p0, %p3704_p13 }
 0x196   :  { %p3707_p2 = pnand %p3706_p1, %p3700_p12 }
 0x198   :  { %3710 = shalt.err (!%p3707_p2)
}
 0x199   :  { %s4522_s6 = sld [smem:[#allocation39_spill]] }
 0x19f   :  { %s3711_s22 = scalar_lea.hbm %s4522_s6, 256 }
 0x1a0   :  { %p3712_p3 = scmp.ne.s32.totalorder %s4522_s6, %s3711_s22  ;;  %p3715_p4 = scmp.lt.u32.totalorder %s3711_s22, %s4522_s6 }
 0x1a2   :  { %p3717_p5 = pnand %p3715_p4, %p3712_p3 }
 0x1a4   :  { %3720 = shalt.err (!%p3717_p5)
}
 0x1a5   :  { %2830 = dma.vmem_to_hbm [thread:$0]  %s2825_s24, 256, %s4522_s6, [#allocation11], %s3861_s2, %s3861_s2, %s3862_s7   ;;  %v3307_v23 = vpop.f32.mrb[14].mxu1  ;;  %v1454_v25 = vpop.f32.mrb[14].mxu0 }
 0x1a6   :  { %1373 = vst.msk [vmem:[#allocation12 + $0x18] sm:$0xff] %vm214_vm6, %v3307_v23  ;;  %v1351_v24 = vpop.f32.mrb[15].mxu1  ;;  %s3867_s23 = smov [#allocation12]   ;;  %s3868_s28 = smov [#allocation13]   ;;  %v3317_v27 = vpop.f32.mrb[15].mxu0 }
 0x1a7   :  { %s2836_s26 = sshll.u32 %s3867_s23, 4  ;;  %1372 = vst.msk [vmem:[#allocation12 + $0x10] sm:$0xff] %vm214_vm6, %v1351_v24  ;;  %s2848_s1 = sshll.u32 %s3868_s28, 4  ;;  %v3310_v26 = vpop.f32.mrb[16].mxu1  ;;  %s2837_s26 = int_to_ptr.vmem [resolvable:$true] %s2836_s26  ;;  %s4404_s1 = int_to_ptr.vmem [resolvable:$true] %s2848_s1 }
 0x1a8   :  { %1458 = vst.msk [vmem:[#allocation13] sm:$0x1] %vm980_vm8, %v1454_v25  ;;  %v1361_v28 = vpop.f32.mrb[17].mxu1  ;;  %s3721_s10 = scalar_lea.vmem %s2837_s26, 768  ;;  %p3726_p7 = scmp.lt.s32.totalorder %s2837_s26, %s2837_s26 }
 0x1a9   :  { %1375 = vst.msk [vmem:[#allocation12 + $0x28] sm:$0xff] %vm214_vm6, %v3310_v26  ;;  %1374 = vst.msk [vmem:[#allocation12 + $0x20] sm:$0xff] %vm214_vm6, %v1361_v28  ;;  %p3722_p6 = scmp.ne.s32.totalorder %s2837_s26, %s3721_s10  ;;  %p3727_p8 = scmp.lt.s32.totalorder %s3721_s10, %s3721_s10 }
 0x1ab   :  { %p3728_p9 = por %p3727_p8, %p3726_p7 }
 0x1ad   :  { %p3729_p10 = pnand %p3728_p9, %p3722_p6 }
 0x1af   :  { %3732 = shalt.err (!%p3729_p10)
}
 0x1b0   :  { %s4523_s11 = sld [smem:[#allocation40_spill]] }
 0x1b6   :  { %s3733_s15 = scalar_lea.hbm %s4523_s11, 768 }
 0x1b7   :  { %p3734_p11 = scmp.ne.s32.totalorder %s4523_s11, %s3733_s15  ;;  %p3737_p12 = scmp.lt.u32.totalorder %s3733_s15, %s4523_s11 }
 0x1b9   :  { %p3739_p13 = pnand %p3737_p12, %p3734_p11 }
 0x1bb   :  { %3742 = shalt.err (!%p3739_p13)
}
 0x1bc   :  { %2842 = dma.vmem_to_hbm [thread:$0]  %s2837_s26, 768, %s4523_s11, [#allocation11], %s3861_s2, %s3861_s2, %s3862_s7   ;;  %v1538_v29 = vpop.f32.mrb[18].mxu1 }
 0x1bd   :  { %1543 = vst.msk [vmem:[#allocation13 + $0x1] sm:$0x1] %vm980_vm8, %v1538_v29  ;;  %v3324_v30 = vpop.f32.mrb[19].mxu1  ;;  %s3743_s16 = scalar_lea.vmem %s4404_s1, 32  ;;  %p3748_p1 = scmp.lt.s32.totalorder %s4404_s1, %s4404_s1 }
 0x1be   :  { %p3744_p0 = scmp.ne.s32.totalorder %s4404_s1, %s3743_s16  ;;  %p3749_p2 = scmp.lt.s32.totalorder %s3743_s16, %s3743_s16 }
 0x1c0   :  { %p3750_p3 = por %p3749_p2, %p3748_p1 }
 0x1c2   :  { %p3751_p4 = pnand %p3750_p3, %p3744_p0 }
 0x1c4   :  { %3754 = shalt.err (!%p3751_p4)
}
 0x1c5   :  { %s4524_s18 = sld [smem:[#allocation41_spill]] }
 0x1cb   :  { %s3755_s0 = scalar_lea.hbm %s4524_s18, 32 }
 0x1cc   :  { %p3756_p5 = scmp.ne.s32.totalorder %s4524_s18, %s3755_s0  ;;  %p3759_p6 = scmp.lt.u32.totalorder %s3755_s0, %s4524_s18 }
 0x1ce   :  { %p3761_p7 = pnand %p3759_p6, %p3756_p5 }
 0x1d0   :  { %3764 = shalt.err (!%p3761_p7)
}
 0x1d1   :  { %s3869_s5 = smov 16   ;;  %s3870_s9 = smov 1   ;;  %v1622_v3 = vpop.f32.mrb[16].mxu0  ;;  %v1706_v31 = vpop.f32.mrb[20].mxu1  ;;  %vm2133_vm9 = vcmask 71680   ;;  %vm2214_vm10 = vcmask 45056  }
 0x1d2   :  { %2854 = dma.vmem_to_hbm [thread:$0]  %s4404_s1, 32, %s4524_s18, [#allocation14], %s3869_s5, %s3869_s5, %s3870_s9   ;;  %1626 = vst.msk [vmem:[#allocation15] sm:$0xff] %vm214_vm6, %v1622_v3  ;;  %v3331_v5 = vpop.f32.mrb[17].mxu0  ;;  %1711 = vst.msk [vmem:[#allocation15 + $0x8] sm:$0xff] %vm214_vm6, %v1706_v31  ;;  %v3338_v32 = vpop.f32.mrb[21].mxu1 }
 0x1d3   :  { %v1791_v33 = vpop.f32.mrb[18].mxu0  ;;  %v1876_v35 = vpop.f32.mrb[22].mxu1  ;;  %s3871_s13 = smov [#allocation15]   ;;  %s3872_s21 = smov [#allocation16]  }
 0x1d4   :  { %1796 = vst.msk [vmem:[#allocation15 + $0x10] sm:$0xff] %vm214_vm6, %v1791_v33  ;;  %v3345_v34 = vpop.f32.mrb[19].mxu0  ;;  %1881 = vst.msk [vmem:[#allocation15 + $0x18] sm:$0xff] %vm214_vm6, %v1876_v35  ;;  %v3352_v36 = vpop.f32.mrb[23].mxu1  ;;  %s2860_s17 = sshll.u32 %s3871_s13, 4  ;;  %s2873_s25 = sshll.u32 %s3872_s21, 4  ;;  %s2861_s17 = int_to_ptr.vmem [resolvable:$true] %s2860_s17  ;;  %s4430_s25 = int_to_ptr.vmem [resolvable:$true] %s2873_s25 }
 0x1d5   :  { %v1960_v37 = vpop.f32.mrb[20].mxu0  ;;  %v2044_v39 = vpop.f32.mrb[24].mxu1  ;;  %s3765_s29 = scalar_lea.vmem %s2861_s17, 768  ;;  %p3770_p9 = scmp.lt.s32.totalorder %s2861_s17, %s2861_s17 }
 0x1d6   :  { %1965 = vst.msk [vmem:[#allocation15 + $0x20] sm:$0xff] %vm214_vm6, %v1960_v37  ;;  %v3359_v38 = vpop.f32.mrb[21].mxu0  ;;  %2049 = vst.msk [vmem:[#allocation15 + $0x28] sm:$0xff] %vm214_vm6, %v2044_v39  ;;  %v3366_v40 = vpop.f32.mrb[25].mxu1  ;;  %p3766_p8 = scmp.ne.s32.totalorder %s2861_s17, %s3765_s29  ;;  %p3771_p10 = scmp.lt.s32.totalorder %s3765_s29, %s3765_s29 }
 0x1d8   :  { %p3772_p11 = por %p3771_p10, %p3770_p9 }
 0x1da   :  { %p3773_p12 = pnand %p3772_p11, %p3766_p8 }
 0x1dc   :  { %3776 = shalt.err (!%p3773_p12)
}
 0x1dd   :  { %s3777_s3 = scalar_lea.hbm %s4041_s27, 768 }
 0x1de   :  { %p3778_p13 = scmp.ne.s32.totalorder %s4041_s27, %s3777_s3  ;;  %p3781_p0 = scmp.lt.u32.totalorder %s3777_s3, %s4041_s27 }
 0x1e0   :  { %p3783_p1 = pnand %p3781_p0, %p3778_p13 }
 0x1e2   :  { %3786 = shalt.err (!%p3783_p1)
}
 0x1e3   :  { %2866 = dma.vmem_to_hbm [thread:$0]  %s2861_s17, 768, %s4041_s27, [#allocation14], %s3861_s2, %s3861_s2, %s3862_s7   ;;  %v2129_v41 = vpop.f32.mrb[22].mxu0  ;;  %v2210_v42 = vpop.f32.mrb[26].mxu1 }
 0x1e4   :  { %2134 = vst.msk [vmem:[#allocation16] sm:$0x7f] %vm2133_vm9, %v2129_v41  ;;  %v3373_v43 = vpop.f32.mrb[23].mxu0  ;;  %v3378_v44 = vpop.f32.mrb[27].mxu1  ;;  %s3787_s8 = scalar_lea.vmem %s4430_s25, 128  ;;  %p3792_p3 = scmp.lt.s32.totalorder %s4430_s25, %s4430_s25 }
 0x1e5   :  { %2215 = vst.msk [vmem:[%s4051_s12] sm:$0x1f] %vm2214_vm10, %v2210_v42  ;;  %p3788_p2 = scmp.ne.s32.totalorder %s4430_s25, %s3787_s8  ;;  %p3793_p4 = scmp.lt.s32.totalorder %s3787_s8, %s3787_s8 }
 0x1e7   :  { %p3794_p5 = por %p3793_p4, %p3792_p3 }
 0x1e9   :  { %p3795_p6 = pnand %p3794_p5, %p3788_p2 }
 0x1eb   :  { %3798 = shalt.err (!%p3795_p6)
}
 0x1ec   :  { %s3799_s27 = scalar_lea.hbm %s4046_s4, 128 }
 0x1ed   :  { %p3800_p7 = scmp.ne.s32.totalorder %s4046_s4, %s3799_s27  ;;  %p3803_p8 = scmp.lt.u32.totalorder %s3799_s27, %s4046_s4 }
 0x1ef   :  { %p3805_p9 = pnand %p3803_p8, %p3800_p7 }
 0x1f1   :  { %3808 = shalt.err (!%p3805_p9)
}
 0x1f2   :  { %2876 = dma.vmem_to_hbm [thread:$0]  %s4430_s25, 128, %s4046_s4, [#allocation17]   ;;  %v2292_v45 = vpop.f32.mrb[24].mxu0  ;;  %v2374_v46 = vpop.f32.mrb[28].mxu1  ;;  %vm2473_vm11 = vcmask 107520   ;;  %vm2471_vm12 = vcmask 113664  }
 0x1f3   :  { %3070 = vst.msk [vmem:[%s4051_s12 + $0x8] sm:$0x1f] %vm2214_vm10, %v2292_v45  ;;  %v3383_v47 = vpop.f32.mrb[25].mxu0  ;;  %3075 = vst.msk [vmem:[%s4051_s12 + $0x10] sm:$0x1f] %vm2214_vm10, %v2374_v46  ;;  %v3388_v48 = vpop.f32.mrb[29].mxu1 }
 0x1f4   :  { %v3395_v49 = vpop.f32.mrb[26].mxu0  ;;  %v3402_v50 = vpop.f32.mrb[30].mxu1 }
 0x1f5   :  { %2474 = vst.msk [vmem:[%s4056_s20 + $0x8] sm:$0x3] %vm2473_vm11, %v3395_v49  ;;  %v2462_v8 = vpop.f32.mrb[27].mxu0  ;;  %3089 = vst.msk [vmem:[%s4056_s20 + $0x18] sm:$0x3] %vm2473_vm11, %v3402_v50  ;;  %v2559_v51 = vpop.f32.mrb[31].mxu1 }
 0x1f6   :  { %2472 = vst.msk [vmem:[%s4056_s20] sm:$0xff] %vm2471_vm12, %v2462_v8  ;;  %3088 = vst.msk [vmem:[%s4056_s20 + $0x10] sm:$0xff] %vm2471_vm12, %v2559_v51  ;;  %v3409_v52 = vpop.f32.mrb[28].mxu0  ;;  %v3416_v53 = vpop.f32.mrb[32].mxu1 }
 0x1f7   :  { %3099 = vst.msk [vmem:[%s4056_s20 + $0x28] sm:$0x3] %vm2473_vm11, %v3409_v52  ;;  %v2655_v54 = vpop.f32.mrb[29].mxu0  ;;  %3109 = vst.msk [vmem:[%s4056_s20 + $0x38] sm:$0x3] %vm2473_vm11, %v3416_v53  ;;  %v2751_v55 = vpop.f32.mrb[33].mxu1 }
 0x1f8   :  { %3098 = vst.msk [vmem:[%s4056_s20 + $0x20] sm:$0xff] %vm2471_vm12, %v2655_v54  ;;  %3108 = vst.msk [vmem:[%s4056_s20 + $0x30] sm:$0xff] %vm2471_vm12, %v2751_v55 }
 0x1f9   :  { %3809 = dma.done.wait [#allocation3], 128  }
 0x1fa   :  { %3810 = vsyncadd [#allocation3], 4294967168 }
 0x1fb   :  { %3811 = dma.done.wait [#allocation5], 1024  }
 0x1fc   :  { %3812 = vsyncadd [#allocation5], 4294966272 }
 0x1fd   :  { %3813 = dma.done.wait [#allocation8], 272  }
 0x1fe   :  { %3814 = vsyncadd [#allocation8], 4294967024 }
 0x1ff   :  { %3815 = dma.done.wait [#allocation11], 1024  }
 0x200   :  { %3816 = vsyncadd [#allocation11], 4294966272 }
 0x201   :  { %3817 = dma.done.wait [#allocation14], 800  }
 0x202   :  { %3818 = vsyncadd [#allocation14], 4294966496 }
 0x203   :  { %3819 = dma.done.wait [#allocation17], 128  }
 0x204   :  { %3820 = vsyncadd [#allocation17], 4294967168 }
 0x205   :  { %2915 = vsyncpa [#allocation3], 1 }
 0x206   :  { %2916 = vsyncpa [#allocation5], 1 }
 0x207   :  { %2917 = vsyncpa [#allocation8], 1 }
 0x208   :  { %2918 = vsyncpa [#allocation11], 1 }
 0x209   :  { %2919 = vsyncpa [#allocation14], 1 }
 0x20a   :  { %2920 = vsyncpa [#allocation17], 1 }

</bundles_post_ra>
